<compile_context>
chip_gen: v7x
topology: tpu7x:2x2x1
jax: 0.10.0
libtpu: 0.0.40
codegen_flags: <defaults>
</compile_context>

<pallas_src>
import functools

import jax
import jax.numpy as jnp
from jax import lax
from jax.experimental import pallas as pl
from jax.experimental.pallas import tpu as pltpu


def _round_up(x, m):
    return (x + m - 1) // m * m


def lstm_kernel(x_ref, wih_ref, b_ref, whh_ref, wout_ref, bout_ref, out_ref,
                h_scr, c_scr, *, hidden_pad, input_size, chunk, num_chunks,
                last_steps, unroll, last_unroll):
    """One grid step = one chunk of the recurrence. h/c persist in VMEM scratch."""
    Hp = hidden_pad
    ci = pl.program_id(0)

    @pl.when(ci == 0)
    def _init():
        h_scr[...] = jnp.zeros_like(h_scr)
        c_scr[...] = jnp.zeros_like(c_scr)

    # Chunk-resident copies (loop carries live in vregs inside the chunk).
    h0 = h_scr[...]
    c0 = c_scr[...]

    wih = wih_ref[...]        # (in, 4Hp)
    bias = b_ref[...]         # (1, 4Hp)   fused b_ih + b_hh
    whh = whh_ref[...]        # (Hp, 4Hp)

    def step(t, carry):
        h, c = carry
        x_t = x_ref[t]                                       # (Bp, in)
        if input_size == 1:
            # Input projection on the VPU: (Bp,1) * (1,4Hp) broadcast + bias.
            xg = x_t * wih + bias
        else:
            xg = jnp.dot(x_t, wih, preferred_element_type=jnp.float32) + bias
        # Only the recurrent matmul sits on the serial critical path.
        gates = xg + jnp.dot(h, whh, preferred_element_type=jnp.float32)
        # Column order [i, f, o, g]: one sigmoid over a contiguous 3*Hp slab.
        sig = jax.nn.sigmoid(gates[:, :3 * Hp])
        g = jnp.tanh(gates[:, 3 * Hp:])
        i = sig[:, 0:Hp]
        f = sig[:, Hp:2 * Hp]
        o = sig[:, 2 * Hp:3 * Hp]
        c_new = f * c + i * g
        h_new = o * jnp.tanh(c_new)
        return (h_new, c_new)

    def run_chunk(n_steps, unr):
        h_T, c_T = lax.fori_loop(0, n_steps, step, (h0, c0), unroll=unr)
        h_scr[...] = h_T
        c_scr[...] = c_T

    if last_steps == chunk:
        # All chunks identical (seq divisible by chunk, or single chunk).
        run_chunk(chunk, unroll)
    else:
        @pl.when(ci < num_chunks - 1)
        def _full():
            run_chunk(chunk, unroll)

        @pl.when(ci == num_chunks - 1)
        def _tail():
            run_chunk(last_steps, last_unroll)

    @pl.when(ci == num_chunks - 1)
    def _finalize():
        # predictions = linear(lstm_out[:, -1]) == linear(h_T); lane-dense store.
        out_ref[...] = (
            jnp.dot(h_scr[...], wout_ref[...], preferred_element_type=jnp.float32)
            + bout_ref[...]
        ).astype(out_ref.dtype)


def lstm_model_forward(input_seq, params, *, chunk_steps=256):
    """input_seq: (batch, seq, input_size), float32. Returns (batch, output_size)."""
    w_ih, w_hh, b_ih, b_hh, w_lin, b_lin = (
        params["w_ih"], params["w_hh"], params["b_ih"], params["b_hh"],
        params["w_lin"], params["b_lin"],
    )
    batch, seq_len, input_size = input_seq.shape
    hidden = w_hh.shape[1]
    out_size = w_lin.shape[0]

    Hp = _round_up(hidden, 128)        # lane-aligned hidden
    OUTp = _round_up(out_size, 128)    # lane-dense output head
    Bp = _round_up(batch, 8)           # fill f32 sublanes

    def pack_gate_cols(w):
        # w: (4H, X) stacked rows [i, f, g, o] (PyTorch order) ->
        # (X, 4Hp) columns reordered to [i, f, o, g], each gate zero-padded to Hp.
        wi = w[0:hidden]
        wf = w[hidden:2 * hidden]
        wg = w[2 * hidden:3 * hidden]
        wo = w[3 * hidden:4 * hidden]
        pad = lambda m: jnp.pad(m, ((0, Hp - hidden), (0, 0)))
        return jnp.concatenate([pad(wi), pad(wf), pad(wo), pad(wg)], axis=0).T

    wih_t = pack_gate_cols(w_ih.astype(jnp.float32))                  # (in, 4Hp)
    whh_t = pack_gate_cols(w_hh.astype(jnp.float32))                  # (H, 4Hp)
    whh_t = jnp.pad(whh_t, ((0, Hp - hidden), (0, 0)))                # (Hp, 4Hp)
    b_fused = pack_gate_cols((b_ih + b_hh).astype(jnp.float32)[:, None])  # (1, 4Hp)

    wout_t = jnp.pad(jnp.transpose(w_lin).astype(jnp.float32),
                     ((0, Hp - hidden), (0, OUTp - out_size)))        # (Hp, OUTp)
    bout = jnp.pad(b_lin.astype(jnp.float32),
                   (0, OUTp - out_size)).reshape(1, -1)               # (1, OUTp)

    # Chunking over the sequence (constant VMEM footprint, DMA overlap).
    chunk = min(seq_len, chunk_steps)
    num_chunks = (seq_len + chunk - 1) // chunk
    last_steps = seq_len - (num_chunks - 1) * chunk
    seq_pad = num_chunks * chunk

    # Raw inputs only, (seq, Bp, in): the input projection happens in-kernel.
    x_tm = jnp.transpose(input_seq.astype(jnp.float32), (1, 0, 2))    # (seq, B, in)
    x_tm = jnp.pad(x_tm, ((0, seq_pad - seq_len), (0, Bp - batch), (0, 0)))

    unroll = True if chunk <= 64 else 16
    last_unroll = True if last_steps <= 64 else 16

    kernel = functools.partial(
        lstm_kernel, hidden_pad=Hp, input_size=input_size, chunk=chunk,
        num_chunks=num_chunks, last_steps=last_steps,
        unroll=unroll, last_unroll=last_unroll)

    def const_spec(shape):
        return pl.BlockSpec(shape, lambda i: (0,) * len(shape))

    # VMEM budget: double-buffered x chunk (lane-padded) + weights + headroom.
    lane_in = _round_up(input_size, 128)
    vmem_limit = int(min(2 * chunk * Bp * lane_in * 4 + (8 << 20), 96 << 20))

    out_padded = pl.pallas_call(
        kernel,
        out_shape=jax.ShapeDtypeStruct((Bp, OUTp), jnp.float32),
        grid_spec=pltpu.PrefetchScalarGridSpec(
            num_scalar_prefetch=0,
            grid=(num_chunks,),
            in_specs=[
                pl.BlockSpec((chunk, Bp, input_size), lambda i: (i, 0, 0)),  # x
                const_spec((input_size, 4 * Hp)),                            # w_ih^T
                const_spec((1, 4 * Hp)),                                     # bias
                const_spec((Hp, 4 * Hp)),                                    # w_hh^T
                const_spec((Hp, OUTp)),                                      # w_lin^T
                const_spec((1, OUTp)),                                       # b_lin
            ],
            out_specs=pl.BlockSpec((Bp, OUTp), lambda i: (0, 0)),
            scratch_shapes=[pltpu.VMEM((Bp, Hp), jnp.float32),   # h carry
                            pltpu.VMEM((Bp, Hp), jnp.float32)],  # c carry
        ),
        compiler_params=pltpu.CompilerParams(
            dimension_semantics=("arbitrary",),
            vmem_limit_bytes=vmem_limit),
    )(x_tm, wih_t, b_fused, whh_t, wout_t, bout)

    return out_padded[:batch, :out_size]


def lstm_model_reference(input_seq, params):
    """Pure-JAX reference with identical semantics (PyTorch gate order i,f,g,o)."""
    w_ih, w_hh, b_ih, b_hh, w_lin, b_lin = (
        params["w_ih"], params["w_hh"], params["b_ih"], params["b_hh"],
        params["w_lin"], params["b_lin"],
    )
    B, T, _ = input_seq.shape
    H = w_hh.shape[1]
    wih_t, whh_t = w_ih.T, w_hh.T
    b = (b_ih + b_hh)[None, :]

    def step(carry, x_t):
        h, c = carry
        gates = x_t @ wih_t + h @ whh_t + b
        i = jax.nn.sigmoid(gates[:, 0:H])
        f = jax.nn.sigmoid(gates[:, H:2 * H])
        g = jnp.tanh(gates[:, 2 * H:3 * H])
        o = jax.nn.sigmoid(gates[:, 3 * H:4 * H])
        c = f * c + i * g
        h = o * jnp.tanh(c)
        return (h, c), None

    init = (jnp.zeros((B, H), jnp.float32), jnp.zeros((B, H), jnp.float32))
    (h_T, _), _ = lax.scan(step, init, jnp.swapaxes(input_seq, 0, 1))
    return h_T @ w_lin.T + b_lin[None, :]


def init_params(key, input_size=1, hidden_size=50, output_size=1):
    """Deterministic init matching PyTorch shapes: U(-1/sqrt(H), 1/sqrt(H))."""
    ks = jax.random.split(key, 6)
    bound = 1.0 / jnp.sqrt(jnp.float32(hidden_size))
    u = lambda k, shape: jax.random.uniform(k, shape, jnp.float32, -bound, bound)
    return {
        "w_ih": u(ks[0], (4 * hidden_size, input_size)),   # weight_ih_l0
        "w_hh": u(ks[1], (4 * hidden_size, hidden_size)),  # weight_hh_l0
        "b_ih": u(ks[2], (4 * hidden_size,)),              # bias_ih_l0
        "b_hh": u(ks[3], (4 * hidden_size,)),              # bias_hh_l0
        "w_lin": u(ks[4], (output_size, hidden_size)),     # linear.weight
        "b_lin": u(ks[5], (output_size,)),                 # linear.bias
    }


if __name__ == "__main__":
    key = jax.random.PRNGKey(0)
    k_params, k_x, k_x2 = jax.random.split(key, 3)

    batch, seq_len, input_size = 2, 8, 1
    hidden_size, output_size = 50, 1

    params = init_params(k_params, input_size, hidden_size, output_size)

    # Small single-chunk case (matches the module's nominal shapes).
    x = jax.random.normal(k_x, (batch, seq_len, input_size), jnp.float32)
    out = jax.block_until_ready(lstm_model_forward(x, params))
    ref = lstm_model_reference(x, params)
    assert out.shape == (batch, output_size), out.shape
    assert jnp.allclose(out, ref, atol=1e-5, rtol=1e-5), (out, ref)

    # Multi-chunk case with a remainder chunk (exercises grid + scratch carry).
    x2 = jax.random.normal(k_x2, (3, 40, input_size), jnp.float32)
    out2 = jax.block_until_ready(lstm_model_forward(x2, params, chunk_steps=16))
    ref2 = lstm_model_reference(x2, params)
    assert out2.shape == (3, output_size), out2.shape
    assert jnp.allclose(out2, ref2, atol=2e-4, rtol=2e-4), (out2, ref2)

    print("KERNEL_OK")
</pallas_src>

<mosaic_0001>
module attributes {stable_mosaic.version = 11 : i64} {
  func.func @lstm_kernel(%arg0: i32, %arg1: memref<8x8x1xf32, #tpu.memory_space<vmem>>, %arg2: memref<1x512xf32, #tpu.memory_space<vmem>>, %arg3: memref<1x512xf32, #tpu.memory_space<vmem>>, %arg4: memref<128x512xf32, #tpu.memory_space<vmem>>, %arg5: memref<128x128xf32, #tpu.memory_space<vmem>>, %arg6: memref<1x128xf32, #tpu.memory_space<vmem>>, %arg7: memref<8x128xf32, #tpu.memory_space<vmem>>, %arg8: memref<8x128xf32, #tpu.memory_space<vmem>>, %arg9: memref<8x128xf32, #tpu.memory_space<vmem>>) attributes {dimension_semantics = [#tpu.dimension_semantics<arbitrary>], iteration_bounds = array<i64: 1>, scalar_prefetch = 0 : i64, scratch_operands = 2 : i64, tpu.core_type = #tpu.core_type<tc>, window_params = [{transform_indices = @transform_0, window_bounds = array<i64: 8, 8, 1>}, {pipeline_mode = #tpu.pipeline_mode<synchronous>, transform_indices = @transform_1, window_bounds = array<i64: 1, 512>}, {pipeline_mode = #tpu.pipeline_mode<synchronous>, transform_indices = @transform_2, window_bounds = array<i64: 1, 512>}, {pipeline_mode = #tpu.pipeline_mode<synchronous>, transform_indices = @transform_3, window_bounds = array<i64: 128, 512>}, {pipeline_mode = #tpu.pipeline_mode<synchronous>, transform_indices = @transform_4, window_bounds = array<i64: 128, 128>}, {pipeline_mode = #tpu.pipeline_mode<synchronous>, transform_indices = @transform_5, window_bounds = array<i64: 1, 128>}, {pipeline_mode = #tpu.pipeline_mode<synchronous>, transform_indices = @transform_6, window_bounds = array<i64: 8, 128>}]} {
    %c0_i32 = arith.constant 0 : i32
    %0 = arith.cmpi eq, %arg0, %c0_i32 : i32
    %1 = arith.extui %0 : i1 to i32
    %c0_i32_0 = arith.constant 0 : i32
    %2 = arith.cmpi ne, %1, %c0_i32_0 : i32
    scf.if %2 {
      %cst_48 = arith.constant 0.000000e+00 : f32
      %221 = vector.broadcast %cst_48 : f32 to vector<8x128xf32>
      %c0_49 = arith.constant 0 : index
      %c0_50 = arith.constant 0 : index
      %222 = vector.load %arg8[%c0_49, %c0_50] : memref<8x128xf32, #tpu.memory_space<vmem>>, vector<8x128xf32>
      tpu.vector_store %arg8[%c0_49, %c0_50], %221 {strides = array<i32>} : memref<8x128xf32, #tpu.memory_space<vmem>>, vector<8x128xf32>,
      %cst_51 = arith.constant 0.000000e+00 : f32
      %223 = vector.broadcast %cst_51 : f32 to vector<8x128xf32>
      %c0_52 = arith.constant 0 : index
      %c0_53 = arith.constant 0 : index
      %224 = vector.load %arg9[%c0_52, %c0_53] : memref<8x128xf32, #tpu.memory_space<vmem>>, vector<8x128xf32>
      tpu.vector_store %arg9[%c0_52, %c0_53], %223 {strides = array<i32>} : memref<8x128xf32, #tpu.memory_space<vmem>>, vector<8x128xf32>,
    } else {
    }
    %c0 = arith.constant 0 : index
    %c0_1 = arith.constant 0 : index
    %3 = vector.load %arg8[%c0, %c0_1] : memref<8x128xf32, #tpu.memory_space<vmem>>, vector<8x128xf32>
    %c0_2 = arith.constant 0 : index
    %c0_3 = arith.constant 0 : index
    %4 = vector.load %arg9[%c0_2, %c0_3] : memref<8x128xf32, #tpu.memory_space<vmem>>, vector<8x128xf32>
    %c0_4 = arith.constant 0 : index
    %c0_5 = arith.constant 0 : index
    %5 = vector.load %arg2[%c0_4, %c0_5] : memref<1x512xf32, #tpu.memory_space<vmem>>, vector<1x512xf32>
    %c0_6 = arith.constant 0 : index
    %c0_7 = arith.constant 0 : index
    %6 = vector.load %arg3[%c0_6, %c0_7] : memref<1x512xf32, #tpu.memory_space<vmem>>, vector<1x512xf32>
    %c0_8 = arith.constant 0 : index
    %c0_9 = arith.constant 0 : index
    %7 = vector.load %arg4[%c0_8, %c0_9] : memref<128x512xf32, #tpu.memory_space<vmem>>, vector<128x512xf32>
    %c0_i32_10 = arith.constant 0 : i32
    %8 = arith.index_cast %c0_i32_10 : i32 to index
    %c0_11 = arith.constant 0 : index
    %c0_12 = arith.constant 0 : index
    %9 = vector.load %arg1[%8, %c0_11, %c0_12] : memref<8x8x1xf32, #tpu.memory_space<vmem>>, vector<1x8x1xf32>
    %10 = vector.shape_cast %9 : vector<1x8x1xf32> to vector<8x1xf32>
    %11 = vector.broadcast %10 : vector<8x1xf32> to vector<8x512xf32>
    %12 = vector.broadcast %5 : vector<1x512xf32> to vector<8x512xf32>
    %13 = arith.mulf %11, %12 : vector<8x512xf32>
    %14 = vector.broadcast %6 : vector<1x512xf32> to vector<8x512xf32>
    %15 = arith.addf %13, %14 : vector<8x512xf32>
    %cst = arith.constant dense<0.000000e+00> : vector<8x512xf32>
    %16 = tpu.matmul %3, %7, %cst {dimension_numbers = #tpu.dot_dimension_numbers<[1], [0], [0], [1], [0, 0, 1, 1], [], []>} : vector<8x128xf32>, vector<128x512xf32>, vector<8x512xf32> -> vector<8x512xf32>
    %17 = arith.addf %15, %16 : vector<8x512xf32>
    %18 = vector.extract_strided_slice %17 {offsets = [0, 0], sizes = [8, 384], strides = [1, 1]} : vector<8x512xf32> to vector<8x384xf32>
    %19 = arith.negf %18 : vector<8x384xf32>
    %20 = math.exp %19 : vector<8x384xf32>
    %cst_13 = arith.constant 1.000000e+00 : f32
    %21 = vector.broadcast %cst_13 : f32 to vector<8x384xf32>
    %22 = arith.addf %21, %20 : vector<8x384xf32>
    %23 = arith.divf %21, %22 : vector<8x384xf32>
    %24 = vector.extract_strided_slice %17 {offsets = [0, 384], sizes = [8, 128], strides = [1, 1]} : vector<8x512xf32> to vector<8x128xf32>
    %25 = math.tanh %24 : vector<8x128xf32>
    %26 = vector.extract_strided_slice %23 {offsets = [0, 0], sizes = [8, 128], strides = [1, 1]} : vector<8x384xf32> to vector<8x128xf32>
    %27 = vector.extract_strided_slice %23 {offsets = [0, 128], sizes = [8, 128], strides = [1, 1]} : vector<8x384xf32> to vector<8x128xf32>
    %28 = vector.extract_strided_slice %23 {offsets = [0, 256], sizes = [8, 128], strides = [1, 1]} : vector<8x384xf32> to vector<8x128xf32>
    %29 = arith.mulf %27, %4 : vector<8x128xf32>
    %30 = arith.mulf %26, %25 : vector<8x128xf32>
    %31 = arith.addf %29, %30 : vector<8x128xf32>
    %32 = math.tanh %31 : vector<8x128xf32>
    %33 = arith.mulf %28, %32 : vector<8x128xf32>
    %c1_i32 = arith.constant 1 : i32
    %34 = arith.index_cast %c1_i32 : i32 to index
    %c0_14 = arith.constant 0 : index
    %c0_15 = arith.constant 0 : index
    %35 = vector.load %arg1[%34, %c0_14, %c0_15] : memref<8x8x1xf32, #tpu.memory_space<vmem>>, vector<1x8x1xf32>
    %36 = vector.shape_cast %35 : vector<1x8x1xf32> to vector<8x1xf32>
    %37 = vector.broadcast %36 : vector<8x1xf32> to vector<8x512xf32>
    %38 = vector.broadcast %5 : vector<1x512xf32> to vector<8x512xf32>
    %39 = arith.mulf %37, %38 : vector<8x512xf32>
    %40 = vector.broadcast %6 : vector<1x512xf32> to vector<8x512xf32>
    %41 = arith.addf %39, %40 : vector<8x512xf32>
    %cst_16 = arith.constant dense<0.000000e+00> : vector<8x512xf32>
    %42 = tpu.matmul %33, %7, %cst_16 {dimension_numbers = #tpu.dot_dimension_numbers<[1], [0], [0], [1], [0, 0, 1, 1], [], []>} : vector<8x128xf32>, vector<128x512xf32>, vector<8x512xf32> -> vector<8x512xf32>
    %43 = arith.addf %41, %42 : vector<8x512xf32>
    %44 = vector.extract_strided_slice %43 {offsets = [0, 0], sizes = [8, 384], strides = [1, 1]} : vector<8x512xf32> to vector<8x384xf32>
    %45 = arith.negf %44 : vector<8x384xf32>
    %46 = math.exp %45 : vector<8x384xf32>
    %cst_17 = arith.constant 1.000000e+00 : f32
    %47 = vector.broadcast %cst_17 : f32 to vector<8x384xf32>
    %48 = arith.addf %47, %46 : vector<8x384xf32>
    %49 = arith.divf %47, %48 : vector<8x384xf32>
    %50 = vector.extract_strided_slice %43 {offsets = [0, 384], sizes = [8, 128], strides = [1, 1]} : vector<8x512xf32> to vector<8x128xf32>
    %51 = math.tanh %50 : vector<8x128xf32>
    %52 = vector.extract_strided_slice %49 {offsets = [0, 0], sizes = [8, 128], strides = [1, 1]} : vector<8x384xf32> to vector<8x128xf32>
    %53 = vector.extract_strided_slice %49 {offsets = [0, 128], sizes = [8, 128], strides = [1, 1]} : vector<8x384xf32> to vector<8x128xf32>
    %54 = vector.extract_strided_slice %49 {offsets = [0, 256], sizes = [8, 128], strides = [1, 1]} : vector<8x384xf32> to vector<8x128xf32>
    %55 = arith.mulf %53, %31 : vector<8x128xf32>
    %56 = arith.mulf %52, %51 : vector<8x128xf32>
    %57 = arith.addf %55, %56 : vector<8x128xf32>
    %58 = math.tanh %57 : vector<8x128xf32>
    %59 = arith.mulf %54, %58 : vector<8x128xf32>
    %c2_i32 = arith.constant 2 : i32
    %60 = arith.index_cast %c2_i32 : i32 to index
    %c0_18 = arith.constant 0 : index
    %c0_19 = arith.constant 0 : index
    %61 = vector.load %arg1[%60, %c0_18, %c0_19] : memref<8x8x1xf32, #tpu.memory_space<vmem>>, vector<1x8x1xf32>
    %62 = vector.shape_cast %61 : vector<1x8x1xf32> to vector<8x1xf32>
    %63 = vector.broadcast %62 : vector<8x1xf32> to vector<8x512xf32>
    %64 = vector.broadcast %5 : vector<1x512xf32> to vector<8x512xf32>
    %65 = arith.mulf %63, %64 : vector<8x512xf32>
    %66 = vector.broadcast %6 : vector<1x512xf32> to vector<8x512xf32>
    %67 = arith.addf %65, %66 : vector<8x512xf32>
    %cst_20 = arith.constant dense<0.000000e+00> : vector<8x512xf32>
    %68 = tpu.matmul %59, %7, %cst_20 {dimension_numbers = #tpu.dot_dimension_numbers<[1], [0], [0], [1], [0, 0, 1, 1], [], []>} : vector<8x128xf32>, vector<128x512xf32>, vector<8x512xf32> -> vector<8x512xf32>
    %69 = arith.addf %67, %68 : vector<8x512xf32>
    %70 = vector.extract_strided_slice %69 {offsets = [0, 0], sizes = [8, 384], strides = [1, 1]} : vector<8x512xf32> to vector<8x384xf32>
    %71 = arith.negf %70 : vector<8x384xf32>
    %72 = math.exp %71 : vector<8x384xf32>
    %cst_21 = arith.constant 1.000000e+00 : f32
    %73 = vector.broadcast %cst_21 : f32 to vector<8x384xf32>
    %74 = arith.addf %73, %72 : vector<8x384xf32>
    %75 = arith.divf %73, %74 : vector<8x384xf32>
    %76 = vector.extract_strided_slice %69 {offsets = [0, 384], sizes = [8, 128], strides = [1, 1]} : vector<8x512xf32> to vector<8x128xf32>
    %77 = math.tanh %76 : vector<8x128xf32>
    %78 = vector.extract_strided_slice %75 {offsets = [0, 0], sizes = [8, 128], strides = [1, 1]} : vector<8x384xf32> to vector<8x128xf32>
    %79 = vector.extract_strided_slice %75 {offsets = [0, 128], sizes = [8, 128], strides = [1, 1]} : vector<8x384xf32> to vector<8x128xf32>
    %80 = vector.extract_strided_slice %75 {offsets = [0, 256], sizes = [8, 128], strides = [1, 1]} : vector<8x384xf32> to vector<8x128xf32>
    %81 = arith.mulf %79, %57 : vector<8x128xf32>
    %82 = arith.mulf %78, %77 : vector<8x128xf32>
    %83 = arith.addf %81, %82 : vector<8x128xf32>
    %84 = math.tanh %83 : vector<8x128xf32>
    %85 = arith.mulf %80, %84 : vector<8x128xf32>
    %c3_i32 = arith.constant 3 : i32
    %86 = arith.index_cast %c3_i32 : i32 to index
    %c0_22 = arith.constant 0 : index
    %c0_23 = arith.constant 0 : index
    %87 = vector.load %arg1[%86, %c0_22, %c0_23] : memref<8x8x1xf32, #tpu.memory_space<vmem>>, vector<1x8x1xf32>
    %88 = vector.shape_cast %87 : vector<1x8x1xf32> to vector<8x1xf32>
    %89 = vector.broadcast %88 : vector<8x1xf32> to vector<8x512xf32>
    %90 = vector.broadcast %5 : vector<1x512xf32> to vector<8x512xf32>
    %91 = arith.mulf %89, %90 : vector<8x512xf32>
    %92 = vector.broadcast %6 : vector<1x512xf32> to vector<8x512xf32>
    %93 = arith.addf %91, %92 : vector<8x512xf32>
    %cst_24 = arith.constant dense<0.000000e+00> : vector<8x512xf32>
    %94 = tpu.matmul %85, %7, %cst_24 {dimension_numbers = #tpu.dot_dimension_numbers<[1], [0], [0], [1], [0, 0, 1, 1], [], []>} : vector<8x128xf32>, vector<128x512xf32>, vector<8x512xf32> -> vector<8x512xf32>
    %95 = arith.addf %93, %94 : vector<8x512xf32>
    %96 = vector.extract_strided_slice %95 {offsets = [0, 0], sizes = [8, 384], strides = [1, 1]} : vector<8x512xf32> to vector<8x384xf32>
    %97 = arith.negf %96 : vector<8x384xf32>
    %98 = math.exp %97 : vector<8x384xf32>
    %cst_25 = arith.constant 1.000000e+00 : f32
    %99 = vector.broadcast %cst_25 : f32 to vector<8x384xf32>
    %100 = arith.addf %99, %98 : vector<8x384xf32>
    %101 = arith.divf %99, %100 : vector<8x384xf32>
    %102 = vector.extract_strided_slice %95 {offsets = [0, 384], sizes = [8, 128], strides = [1, 1]} : vector<8x512xf32> to vector<8x128xf32>
    %103 = math.tanh %102 : vector<8x128xf32>
    %104 = vector.extract_strided_slice %101 {offsets = [0, 0], sizes = [8, 128], strides = [1, 1]} : vector<8x384xf32> to vector<8x128xf32>
    %105 = vector.extract_strided_slice %101 {offsets = [0, 128], sizes = [8, 128], strides = [1, 1]} : vector<8x384xf32> to vector<8x128xf32>
    %106 = vector.extract_strided_slice %101 {offsets = [0, 256], sizes = [8, 128], strides = [1, 1]} : vector<8x384xf32> to vector<8x128xf32>
    %107 = arith.mulf %105, %83 : vector<8x128xf32>
    %108 = arith.mulf %104, %103 : vector<8x128xf32>
    %109 = arith.addf %107, %108 : vector<8x128xf32>
    %110 = math.tanh %109 : vector<8x128xf32>
    %111 = arith.mulf %106, %110 : vector<8x128xf32>
    %c4_i32 = arith.constant 4 : i32
    %112 = arith.index_cast %c4_i32 : i32 to index
    %c0_26 = arith.constant 0 : index
    %c0_27 = arith.constant 0 : index
    %113 = vector.load %arg1[%112, %c0_26, %c0_27] : memref<8x8x1xf32, #tpu.memory_space<vmem>>, vector<1x8x1xf32>
    %114 = vector.shape_cast %113 : vector<1x8x1xf32> to vector<8x1xf32>
    %115 = vector.broadcast %114 : vector<8x1xf32> to vector<8x512xf32>
    %116 = vector.broadcast %5 : vector<1x512xf32> to vector<8x512xf32>
    %117 = arith.mulf %115, %116 : vector<8x512xf32>
    %118 = vector.broadcast %6 : vector<1x512xf32> to vector<8x512xf32>
    %119 = arith.addf %117, %118 : vector<8x512xf32>
    %cst_28 = arith.constant dense<0.000000e+00> : vector<8x512xf32>
    %120 = tpu.matmul %111, %7, %cst_28 {dimension_numbers = #tpu.dot_dimension_numbers<[1], [0], [0], [1], [0, 0, 1, 1], [], []>} : vector<8x128xf32>, vector<128x512xf32>, vector<8x512xf32> -> vector<8x512xf32>
    %121 = arith.addf %119, %120 : vector<8x512xf32>
    %122 = vector.extract_strided_slice %121 {offsets = [0, 0], sizes = [8, 384], strides = [1, 1]} : vector<8x512xf32> to vector<8x384xf32>
    %123 = arith.negf %122 : vector<8x384xf32>
    %124 = math.exp %123 : vector<8x384xf32>
    %cst_29 = arith.constant 1.000000e+00 : f32
    %125 = vector.broadcast %cst_29 : f32 to vector<8x384xf32>
    %126 = arith.addf %125, %124 : vector<8x384xf32>
    %127 = arith.divf %125, %126 : vector<8x384xf32>
    %128 = vector.extract_strided_slice %121 {offsets = [0, 384], sizes = [8, 128], strides = [1, 1]} : vector<8x512xf32> to vector<8x128xf32>
    %129 = math.tanh %128 : vector<8x128xf32>
    %130 = vector.extract_strided_slice %127 {offsets = [0, 0], sizes = [8, 128], strides = [1, 1]} : vector<8x384xf32> to vector<8x128xf32>
    %131 = vector.extract_strided_slice %127 {offsets = [0, 128], sizes = [8, 128], strides = [1, 1]} : vector<8x384xf32> to vector<8x128xf32>
    %132 = vector.extract_strided_slice %127 {offsets = [0, 256], sizes = [8, 128], strides = [1, 1]} : vector<8x384xf32> to vector<8x128xf32>
    %133 = arith.mulf %131, %109 : vector<8x128xf32>
    %134 = arith.mulf %130, %129 : vector<8x128xf32>
    %135 = arith.addf %133, %134 : vector<8x128xf32>
    %136 = math.tanh %135 : vector<8x128xf32>
    %137 = arith.mulf %132, %136 : vector<8x128xf32>
    %c5_i32 = arith.constant 5 : i32
    %138 = arith.index_cast %c5_i32 : i32 to index
    %c0_30 = arith.constant 0 : index
    %c0_31 = arith.constant 0 : index
    %139 = vector.load %arg1[%138, %c0_30, %c0_31] : memref<8x8x1xf32, #tpu.memory_space<vmem>>, vector<1x8x1xf32>
    %140 = vector.shape_cast %139 : vector<1x8x1xf32> to vector<8x1xf32>
    %141 = vector.broadcast %140 : vector<8x1xf32> to vector<8x512xf32>
    %142 = vector.broadcast %5 : vector<1x512xf32> to vector<8x512xf32>
    %143 = arith.mulf %141, %142 : vector<8x512xf32>
    %144 = vector.broadcast %6 : vector<1x512xf32> to vector<8x512xf32>
    %145 = arith.addf %143, %144 : vector<8x512xf32>
    %cst_32 = arith.constant dense<0.000000e+00> : vector<8x512xf32>
    %146 = tpu.matmul %137, %7, %cst_32 {dimension_numbers = #tpu.dot_dimension_numbers<[1], [0], [0], [1], [0, 0, 1, 1], [], []>} : vector<8x128xf32>, vector<128x512xf32>, vector<8x512xf32> -> vector<8x512xf32>
    %147 = arith.addf %145, %146 : vector<8x512xf32>
    %148 = vector.extract_strided_slice %147 {offsets = [0, 0], sizes = [8, 384], strides = [1, 1]} : vector<8x512xf32> to vector<8x384xf32>
    %149 = arith.negf %148 : vector<8x384xf32>
    %150 = math.exp %149 : vector<8x384xf32>
    %cst_33 = arith.constant 1.000000e+00 : f32
    %151 = vector.broadcast %cst_33 : f32 to vector<8x384xf32>
    %152 = arith.addf %151, %150 : vector<8x384xf32>
    %153 = arith.divf %151, %152 : vector<8x384xf32>
    %154 = vector.extract_strided_slice %147 {offsets = [0, 384], sizes = [8, 128], strides = [1, 1]} : vector<8x512xf32> to vector<8x128xf32>
    %155 = math.tanh %154 : vector<8x128xf32>
    %156 = vector.extract_strided_slice %153 {offsets = [0, 0], sizes = [8, 128], strides = [1, 1]} : vector<8x384xf32> to vector<8x128xf32>
    %157 = vector.extract_strided_slice %153 {offsets = [0, 128], sizes = [8, 128], strides = [1, 1]} : vector<8x384xf32> to vector<8x128xf32>
    %158 = vector.extract_strided_slice %153 {offsets = [0, 256], sizes = [8, 128], strides = [1, 1]} : vector<8x384xf32> to vector<8x128xf32>
    %159 = arith.mulf %157, %135 : vector<8x128xf32>
    %160 = arith.mulf %156, %155 : vector<8x128xf32>
    %161 = arith.addf %159, %160 : vector<8x128xf32>
    %162 = math.tanh %161 : vector<8x128xf32>
    %163 = arith.mulf %158, %162 : vector<8x128xf32>
    %c6_i32 = arith.constant 6 : i32
    %164 = arith.index_cast %c6_i32 : i32 to index
    %c0_34 = arith.constant 0 : index
    %c0_35 = arith.constant 0 : index
    %165 = vector.load %arg1[%164, %c0_34, %c0_35] : memref<8x8x1xf32, #tpu.memory_space<vmem>>, vector<1x8x1xf32>
    %166 = vector.shape_cast %165 : vector<1x8x1xf32> to vector<8x1xf32>
    %167 = vector.broadcast %166 : vector<8x1xf32> to vector<8x512xf32>
    %168 = vector.broadcast %5 : vector<1x512xf32> to vector<8x512xf32>
    %169 = arith.mulf %167, %168 : vector<8x512xf32>
    %170 = vector.broadcast %6 : vector<1x512xf32> to vector<8x512xf32>
    %171 = arith.addf %169, %170 : vector<8x512xf32>
    %cst_36 = arith.constant dense<0.000000e+00> : vector<8x512xf32>
    %172 = tpu.matmul %163, %7, %cst_36 {dimension_numbers = #tpu.dot_dimension_numbers<[1], [0], [0], [1], [0, 0, 1, 1], [], []>} : vector<8x128xf32>, vector<128x512xf32>, vector<8x512xf32> -> vector<8x512xf32>
    %173 = arith.addf %171, %172 : vector<8x512xf32>
    %174 = vector.extract_strided_slice %173 {offsets = [0, 0], sizes = [8, 384], strides = [1, 1]} : vector<8x512xf32> to vector<8x384xf32>
    %175 = arith.negf %174 : vector<8x384xf32>
    %176 = math.exp %175 : vector<8x384xf32>
    %cst_37 = arith.constant 1.000000e+00 : f32
    %177 = vector.broadcast %cst_37 : f32 to vector<8x384xf32>
    %178 = arith.addf %177, %176 : vector<8x384xf32>
    %179 = arith.divf %177, %178 : vector<8x384xf32>
    %180 = vector.extract_strided_slice %173 {offsets = [0, 384], sizes = [8, 128], strides = [1, 1]} : vector<8x512xf32> to vector<8x128xf32>
    %181 = math.tanh %180 : vector<8x128xf32>
    %182 = vector.extract_strided_slice %179 {offsets = [0, 0], sizes = [8, 128], strides = [1, 1]} : vector<8x384xf32> to vector<8x128xf32>
    %183 = vector.extract_strided_slice %179 {offsets = [0, 128], sizes = [8, 128], strides = [1, 1]} : vector<8x384xf32> to vector<8x128xf32>
    %184 = vector.extract_strided_slice %179 {offsets = [0, 256], sizes = [8, 128], strides = [1, 1]} : vector<8x384xf32> to vector<8x128xf32>
    %185 = arith.mulf %183, %161 : vector<8x128xf32>
    %186 = arith.mulf %182, %181 : vector<8x128xf32>
    %187 = arith.addf %185, %186 : vector<8x128xf32>
    %188 = math.tanh %187 : vector<8x128xf32>
    %189 = arith.mulf %184, %188 : vector<8x128xf32>
    %c7_i32 = arith.constant 7 : i32
    %190 = arith.index_cast %c7_i32 : i32 to index
    %c0_38 = arith.constant 0 : index
    %c0_39 = arith.constant 0 : index
    %191 = vector.load %arg1[%190, %c0_38, %c0_39] : memref<8x8x1xf32, #tpu.memory_space<vmem>>, vector<1x8x1xf32>
    %192 = vector.shape_cast %191 : vector<1x8x1xf32> to vector<8x1xf32>
    %193 = vector.broadcast %192 : vector<8x1xf32> to vector<8x512xf32>
    %194 = vector.broadcast %5 : vector<1x512xf32> to vector<8x512xf32>
    %195 = arith.mulf %193, %194 : vector<8x512xf32>
    %196 = vector.broadcast %6 : vector<1x512xf32> to vector<8x512xf32>
    %197 = arith.addf %195, %196 : vector<8x512xf32>
    %cst_40 = arith.constant dense<0.000000e+00> : vector<8x512xf32>
    %198 = tpu.matmul %189, %7, %cst_40 {dimension_numbers = #tpu.dot_dimension_numbers<[1], [0], [0], [1], [0, 0, 1, 1], [], []>} : vector<8x128xf32>, vector<128x512xf32>, vector<8x512xf32> -> vector<8x512xf32>
    %199 = arith.addf %197, %198 : vector<8x512xf32>
    %200 = vector.extract_strided_slice %199 {offsets = [0, 0], sizes = [8, 384], strides = [1, 1]} : vector<8x512xf32> to vector<8x384xf32>
    %201 = arith.negf %200 : vector<8x384xf32>
    %202 = math.exp %201 : vector<8x384xf32>
    %cst_41 = arith.constant 1.000000e+00 : f32
    %203 = vector.broadcast %cst_41 : f32 to vector<8x384xf32>
    %204 = arith.addf %203, %202 : vector<8x384xf32>
    %205 = arith.divf %203, %204 : vector<8x384xf32>
    %206 = vector.extract_strided_slice %199 {offsets = [0, 384], sizes = [8, 128], strides = [1, 1]} : vector<8x512xf32> to vector<8x128xf32>
    %207 = math.tanh %206 : vector<8x128xf32>
    %208 = vector.extract_strided_slice %205 {offsets = [0, 0], sizes = [8, 128], strides = [1, 1]} : vector<8x384xf32> to vector<8x128xf32>
    %209 = vector.extract_strided_slice %205 {offsets = [0, 128], sizes = [8, 128], strides = [1, 1]} : vector<8x384xf32> to vector<8x128xf32>
    %210 = vector.extract_strided_slice %205 {offsets = [0, 256], sizes = [8, 128], strides = [1, 1]} : vector<8x384xf32> to vector<8x128xf32>
    %211 = arith.mulf %209, %187 : vector<8x128xf32>
    %212 = arith.mulf %208, %207 : vector<8x128xf32>
    %213 = arith.addf %211, %212 : vector<8x128xf32>
    %214 = math.tanh %213 : vector<8x128xf32>
    %215 = arith.mulf %210, %214 : vector<8x128xf32>
    %c8_i32 = arith.constant 8 : i32
    %c0_42 = arith.constant 0 : index
    %c0_43 = arith.constant 0 : index
    %216 = vector.load %arg8[%c0_42, %c0_43] : memref<8x128xf32, #tpu.memory_space<vmem>>, vector<8x128xf32>
    tpu.vector_store %arg8[%c0_42, %c0_43], %215 {strides = array<i32>} : memref<8x128xf32, #tpu.memory_space<vmem>>, vector<8x128xf32>,
    %c0_44 = arith.constant 0 : index
    %c0_45 = arith.constant 0 : index
    %217 = vector.load %arg9[%c0_44, %c0_45] : memref<8x128xf32, #tpu.memory_space<vmem>>, vector<8x128xf32>
    tpu.vector_store %arg9[%c0_44, %c0_45], %213 {strides = array<i32>} : memref<8x128xf32, #tpu.memory_space<vmem>>, vector<8x128xf32>,
    %c0_i32_46 = arith.constant 0 : i32
    %218 = arith.cmpi eq, %arg0, %c0_i32_46 : i32
    %219 = arith.extui %218 : i1 to i32
    %c0_i32_47 = arith.constant 0 : i32
    %220 = arith.cmpi ne, %219, %c0_i32_47 : i32
    scf.if %220 {
      %c0_48 = arith.constant 0 : index
      %c0_49 = arith.constant 0 : index
      %221 = vector.load %arg8[%c0_48, %c0_49] : memref<8x128xf32, #tpu.memory_space<vmem>>, vector<8x128xf32>
      %c0_50 = arith.constant 0 : index
      %c0_51 = arith.constant 0 : index
      %222 = vector.load %arg5[%c0_50, %c0_51] : memref<128x128xf32, #tpu.memory_space<vmem>>, vector<128x128xf32>
      %cst_52 = arith.constant dense<0.000000e+00> : vector<8x128xf32>
      %223 = tpu.matmul %221, %222, %cst_52 {dimension_numbers = #tpu.dot_dimension_numbers<[1], [0], [0], [1], [0, 0, 1, 1], [], []>} : vector<8x128xf32>, vector<128x128xf32>, vector<8x128xf32> -> vector<8x128xf32>
      %c0_53 = arith.constant 0 : index
      %c0_54 = arith.constant 0 : index
      %224 = vector.load %arg6[%c0_53, %c0_54] : memref<1x128xf32, #tpu.memory_space<vmem>>, vector<1x128xf32>
      %225 = vector.broadcast %224 : vector<1x128xf32> to vector<8x128xf32>
      %226 = arith.addf %223, %225 : vector<8x128xf32>
      %c0_55 = arith.constant 0 : index
      %c0_56 = arith.constant 0 : index
      %227 = vector.load %arg7[%c0_55, %c0_56] : memref<8x128xf32, #tpu.memory_space<vmem>>, vector<8x128xf32>
      tpu.vector_store %arg7[%c0_55, %c0_56], %226 {strides = array<i32>} : memref<8x128xf32, #tpu.memory_space<vmem>>, vector<8x128xf32>,
    } else {
    }
    return
  }
  func.func @transform_0(%arg0: i32) -> (i32, i32, i32) {
    %c0_i32 = arith.constant 0 : i32
    %c0_i32_0 = arith.constant 0 : i32
    %c0_i32_1 = arith.constant 0 : i32
    return %arg0, %c0_i32, %c0_i32_0 : i32, i32, i32
  }
  func.func @transform_1(%arg0: i32) -> (i32, i32) {
    %c0_i32 = arith.constant 0 : i32
    %c0_i32_0 = arith.constant 0 : i32
    %c0_i32_1 = arith.constant 0 : i32
    return %c0_i32, %c0_i32_0 : i32, i32
  }
  func.func @transform_2(%arg0: i32) -> (i32, i32) {
    %c0_i32 = arith.constant 0 : i32
    %c0_i32_0 = arith.constant 0 : i32
    %c0_i32_1 = arith.constant 0 : i32
    return %c0_i32, %c0_i32_0 : i32, i32
  }
  func.func @transform_3(%arg0: i32) -> (i32, i32) {
    %c0_i32 = arith.constant 0 : i32
    %c0_i32_0 = arith.constant 0 : i32
    %c0_i32_1 = arith.constant 0 : i32
    return %c0_i32, %c0_i32_0 : i32, i32
  }
  func.func @transform_4(%arg0: i32) -> (i32, i32) {
    %c0_i32 = arith.constant 0 : i32
    %c0_i32_0 = arith.constant 0 : i32
    %c0_i32_1 = arith.constant 0 : i32
    return %c0_i32, %c0_i32_0 : i32, i32
  }
  func.func @transform_5(%arg0: i32) -> (i32, i32) {
    %c0_i32 = arith.constant 0 : i32
    %c0_i32_0 = arith.constant 0 : i32
    %c0_i32_1 = arith.constant 0 : i32
    return %c0_i32, %c0_i32_0 : i32, i32
  }
  func.func @transform_6(%arg0: i32) -> (i32, i32) {
    %c0_i32 = arith.constant 0 : i32
    %c0_i32_0 = arith.constant 0 : i32
    %c0_i32_1 = arith.constant 0 : i32
    return %c0_i32, %c0_i32_0 : i32, i32
  }
}

</mosaic_0001>

<bundles_post_ra>
// kernel: tpu_custom_call.1
= control target key start
LH: loop header
LB: loop body
LE: loop exit
PB: predicated region body
PF: predicated region fallthrough
CT: control target
= control target key end

     0   :  { %11 = vsyncpa [#allocation5], 0  ;;  %s3158_s0 = inlined_call_operand.vmem [shape: f32[8,8,1], index: 0, kind: input, shape index: {}]   ;;  %s3159_s1 = inlined_call_operand.vmem [shape: f32[1,512], index: 1, kind: input, shape index: {}]   ;;  %s3160_s2 = inlined_call_operand.vmem [shape: f32[1,512], index: 2, kind: input, shape index: {}]   ;;  %s3161_s3 = inlined_call_operand.hbm [shape: f32[128,512], index: 3, kind: input, shape index: {}]   ;;  %s3162_s4 = inlined_call_operand.hbm [shape: f32[128,128], index: 4, kind: input, shape index: {}]   ;;  %s3163_s5 = inlined_call_operand.vmem [shape: f32[1,128], index: 5, kind: input, shape index: {}]   ;;  %s3164_s6 = inlined_call_operand.hbm [shape: f32[8,128], index: 6, kind: output, shape index: {}]  }
   0x1   :  { %12 = vsyncpa [#allocation8], 0 }
   0x2   :  { %13 = vsyncpa [#allocation6], 0  ;;  %s2596_s21 = smov [#allocation4]   ;;  %s2524_s25 = scalar_lea.hbm %s3161_s3, 8192 }
   0x3   :  { %s25_s22 = sshll.u32 %s2596_s21, 4  ;;  %p2525_p0 = scmp.ne.s32.totalorder %s3161_s3, %s2524_s25  ;;  %s26_s22 = int_to_ptr.vmem [resolvable:$true] %s25_s22 }
   0x4   :  { %p2528_p1 = scmp.lt.u32.totalorder %s2524_s25, %s3161_s3 }
   0x6   :  { %p2530_p2 = pnand %p2528_p1, %p2525_p0 }
   0x8   :  { %2533 = shalt.err (!%p2530_p2)
}
   0x9   :  { %s2534_s30 = scalar_lea.vmem %s26_s22, 8192  ;;  %p2539_p4 = scmp.lt.s32.totalorder %s26_s22, %s26_s22 }
   0xa   :  { %p2535_p3 = scmp.ne.s32.totalorder %s26_s22, %s2534_s30  ;;  %p2540_p5 = scmp.lt.s32.totalorder %s2534_s30, %s2534_s30 }
   0xc   :  { %p2541_p6 = por %p2540_p5, %p2539_p4 }
   0xe   :  { %p2542_p7 = pnand %p2541_p6, %p2535_p3 }
  0x10   :  { %2545 = shalt.err (!%p2542_p7)
}
  0x11   :  { %s2597_s7 = smov 512   ;;  %s2598_s8 = smov 32  }
  0x12   :  { %31 = dma.hbm_to_vmem [thread:$0]  %s3161_s3, 8192, %s26_s22, [#allocation5], %s2597_s7, %s2597_s7, %s2598_s8  }
  0x13   :  { %s2599_s11 = smov [#allocation7]   ;;  %s2546_s15 = scalar_lea.hbm %s3162_s4, 2048 }
  0x14   :  { %s37_s12 = sshll.u32 %s2599_s11, 4  ;;  %p2547_p8 = scmp.ne.s32.totalorder %s3162_s4, %s2546_s15  ;;  %s38_s12 = int_to_ptr.vmem [resolvable:$true] %s37_s12 }
  0x15   :  { %p2550_p9 = scmp.lt.u32.totalorder %s2546_s15, %s3162_s4 }
  0x17   :  { %p2552_p10 = pnand %p2550_p9, %p2547_p8 }
  0x19   :  { %2555 = shalt.err (!%p2552_p10)
}
  0x1a   :  { %s2556_s20 = scalar_lea.vmem %s38_s12, 2048  ;;  %p2561_p12 = scmp.lt.s32.totalorder %s38_s12, %s38_s12 }
  0x1b   :  { %p2557_p11 = scmp.ne.s32.totalorder %s38_s12, %s2556_s20  ;;  %p2562_p13 = scmp.lt.s32.totalorder %s2556_s20, %s2556_s20 }
  0x1d   :  { %p2563_p0 = por %p2562_p13, %p2561_p12 }
  0x1f   :  { %p2564_p1 = pnand %p2563_p0, %p2557_p11 }
  0x21   :  { %2567 = shalt.err (!%p2564_p1)
}
  0x22   :  { %s2600_s3 = smov 128   ;;  %s2601_s21 = smov 8  }
  0x23   :  { %43 = dma.hbm_to_vmem [thread:$0]  %s3162_s4, 2048, %s38_s12, [#allocation8], %s2600_s3, %s2600_s3, %s2601_s21  }
  0x24   :  { %2590 = dma.done.wait [#allocation5], 8192  }
  0x25   :  { %2591 = vsyncadd [#allocation5], 4294959104 }
  0x26   :  { %2592 = dma.done.wait [#allocation8], 2048  }
  0x27   :  { %2593 = vsyncadd [#allocation8], 4294965248  ;;  %v2602_v0 = vmov 0.0   ;;  %v2603_v1 = vmov 0   ;;  %v63_v2 = vld [vmem:[#allocation4 + $0x8] sm:$0xff]  ;;  %v65_v4 = vld [vmem:[#allocation4 + $0x18] sm:$0xff] }
  0x28   :  { %246 = vmatprep.mubr.f32.mxu0 %v2602_v0  ;;  %317 = vmatprep.mubr.f32.mxu1 %v2602_v0  ;;  %v67_v3 = vld [vmem:[#allocation4 + $0x28] sm:$0xff]  ;;  %v69_v6 = vld [vmem:[#allocation4 + $0x38] sm:$0xff]  ;;  %v62_v7 = vld [vmem:[#allocation4] sm:$0xff]  ;;  %vm2605_vm0 = vmmov 0   ;;  %s2606_s18 = smov [#allocation9]  }
  0x29   :  { %2394 = vset.pattern.permute.xlu0 %v2603_v1  ;;  %2395 = vset.pattern.permute.xlu1 %v2603_v1  ;;  %v2668_v5 = vpack.c.bf16 %v67_v3, %v63_v2  ;;  %v66_v8 = vld [vmem:[#allocation4 + $0x20] sm:$0xff]  ;;  %v2670_v9 = vpack.c.bf16 %v69_v6, %v65_v4  ;;  %v64_v11 = vld [vmem:[#allocation4 + $0x10] sm:$0xff]  ;;  %v71_v13 = vld [vmem:[#allocation4 + $0x48] sm:$0xff]  ;;  %s1753_s19 = sshll.u32 %s2606_s18, 4  ;;  %s1754_s19 = int_to_ptr.vmem [resolvable:$true] %s1753_s19 }
  0x2a   :  { %v2672_v10 = vpack.c.bf16 %v66_v8, %v62_v7  ;;  %v68_v12 = vld [vmem:[#allocation4 + $0x30] sm:$0xff]  ;;  %v75_v15 = vld [vmem:[#allocation4 + $0x68] sm:$0xff]  ;;  %v73_v16 = vld [vmem:[#allocation4 + $0x58] sm:$0xff]  ;;  %s2568_s20 = scalar_lea.vmem %s1754_s19, 128  ;;  %p2573_p3 = scmp.lt.s32.totalorder %s1754_s19, %s1754_s19 }
  0x2b   :  { %1848 = vmatprep.subr.bf16.mxu0 %v2668_v5  ;;  %v2675_v14 = vpack.c.bf16 %v68_v12, %v64_v11  ;;  %v77_v17 = vld [vmem:[#allocation4 + $0x78] sm:$0xff]  ;;  %1880 = vmatprep.subr.bf16.mxu1 %v2670_v9  ;;  %v2679_v18 = vpack.c.bf16 %v75_v15, %v71_v13  ;;  %v70_v20 = vld [vmem:[#allocation4 + $0x40] sm:$0xff]  ;;  %v72_v22 = vld [vmem:[#allocation4 + $0x50] sm:$0xff]  ;;  %p2569_p2 = scmp.ne.s32.totalorder %s1754_s19, %s2568_s20  ;;  %p2574_p4 = scmp.lt.s32.totalorder %s2568_s20, %s2568_s20 }
  0x2c   :  { %1850 = vmatpush1.bf16.msra.mxu0 %v2672_v10  ;;  %v2681_v19 = vpack.c.bf16 %v77_v17, %v73_v16  ;;  %v74_v21 = vld [vmem:[#allocation4 + $0x60] sm:$0xff]  ;;  %v76_v24 = vld [vmem:[#allocation4 + $0x70] sm:$0xff]  ;;  %v79_v25 = vld [vmem:[#allocation4 + $0x88] sm:$0xff] }
  0x2d   :  { %1882 = vmatpush1.bf16.msra.mxu1 %v2675_v14  ;;  %v2684_v23 = vpack.c.bf16 %v74_v21, %v70_v20  ;;  %v83_v26 = vld [vmem:[#allocation4 + $0xa8] sm:$0xff]  ;;  %1852 = vmatprep.subr.bf16.mxu0 %v2679_v18  ;;  %v2688_v27 = vpack.c.bf16 %v76_v24, %v72_v22  ;;  %v81_v29 = vld [vmem:[#allocation4 + $0x98] sm:$0xff]  ;;  %v78_v31 = vld [vmem:[#allocation4 + $0x80] sm:$0xff]  ;;  %p2575_p5 = por %p2574_p4, %p2573_p3 }
  0x2e   :  { %1884 = vmatprep.subr.bf16.mxu1 %v2681_v19  ;;  %v2690_v28 = vpack.c.bf16 %v83_v26, %v79_v25  ;;  %v85_v30 = vld [vmem:[#allocation4 + $0xb8] sm:$0xff]  ;;  %v82_v33 = vld [vmem:[#allocation4 + $0xa0] sm:$0xff]  ;;  %v80_v34 = vld [vmem:[#allocation4 + $0x90] sm:$0xff] }
  0x2f   :  { %v2692_v32 = vpack.c.bf16 %v85_v30, %v81_v29  ;;  %v84_v35 = vld [vmem:[#allocation4 + $0xb0] sm:$0xff]  ;;  %v2695_v36 = vpack.c.bf16 %v82_v33, %v78_v31  ;;  %v87_v37 = vld [vmem:[#allocation4 + $0xc8] sm:$0xff]  ;;  %v89_v39 = vld [vmem:[#allocation4 + $0xd8] sm:$0xff]  ;;  %p2576_p6 = pnand %p2575_p5, %p2569_p2 }
  0x30   :  { %1854 = vmatpush1.bf16.msra.mxu0 %v2684_v23  ;;  %v91_v38 = vld [vmem:[#allocation4 + $0xe8] sm:$0xff]  ;;  %v2699_v40 = vpack.c.bf16 %v84_v35, %v80_v34  ;;  %v93_v42 = vld [vmem:[#allocation4 + $0xf8] sm:$0xff]  ;;  %v86_v43 = vld [vmem:[#allocation4 + $0xc0] sm:$0xff] }
  0x31   :  { %1886 = vmatpush1.bf16.msra.mxu1 %v2688_v27  ;;  %1856 = vmatprep.subr.bf16.mxu0 %v2690_v28  ;;  %v2701_v41 = vpack.c.bf16 %v91_v38, %v87_v37  ;;  %v90_v44 = vld [vmem:[#allocation4 + $0xe0] sm:$0xff]  ;;  %v2704_v45 = vpack.c.bf16 %v93_v42, %v89_v39  ;;  %v88_v46 = vld [vmem:[#allocation4 + $0xd0] sm:$0xff]  ;;  %v95_v48 = vld [vmem:[#allocation4 + $0x108] sm:$0xff] }
  0x32   :  { %1888 = vmatprep.subr.bf16.mxu1 %v2692_v32  ;;  %v92_v47 = vld [vmem:[#allocation4 + $0xf0] sm:$0xff]  ;;  %v99_v49 = vld [vmem:[#allocation4 + $0x128] sm:$0xff]  ;;  %v97_v50 = vld [vmem:[#allocation4 + $0x118] sm:$0xff]  ;;  %v2707_v52 = vpack.c.bf16 %v90_v44, %v86_v43 }
  0x33   :  { %v101_v51 = vld [vmem:[#allocation4 + $0x138] sm:$0xff]  ;;  %v2711_v53 = vpack.c.bf16 %v92_v47, %v88_v46  ;;  %v2713_v54 = vpack.c.bf16 %v99_v49, %v95_v48  ;;  %v94_v55 = vld [vmem:[#allocation4 + $0x100] sm:$0xff]  ;;  %v96_v57 = vld [vmem:[#allocation4 + $0x110] sm:$0xff] }
  0x34   :  { %1858 = vmatpush1.bf16.msra.mxu0 %v2695_v36  ;;  %v98_v56 = vld [vmem:[#allocation4 + $0x120] sm:$0xff]  ;;  %v2716_v58 = vpack.c.bf16 %v101_v51, %v97_v50  ;;  %v100_v59 = vld [vmem:[#allocation4 + $0x130] sm:$0xff]  ;;  %v103_v60 = vld [vmem:[#allocation4 + $0x148] sm:$0xff] }
  0x35   :  { %1890 = vmatpush1.bf16.msra.mxu1 %v2699_v40  ;;  %1860 = vmatprep.subr.bf16.mxu0 %v2701_v41  ;;  %v107_v61 = vld [vmem:[#allocation4 + $0x168] sm:$0xff]  ;;  %v105_v62 = vld [vmem:[#allocation4 + $0x158] sm:$0xff]  ;;  %v2719_v1 = vpack.c.bf16 %v98_v56, %v94_v55  ;;  %v2723_v2 = vpack.c.bf16 %v100_v59, %v96_v57  ;;  %v102_v4 = vld [vmem:[#allocation4 + $0x140] sm:$0xff]  ;;  %v133_v56 = vlaneseq }
  0x36   :  { %1892 = vmatprep.subr.bf16.mxu1 %v2704_v45  ;;  %v109_v63 = vld [vmem:[#allocation4 + $0x178] sm:$0xff]  ;;  %v2725_v3 = vpack.c.bf16 %v107_v61, %v103_v60  ;;  %v106_v6 = vld [vmem:[#allocation4 + $0x160] sm:$0xff]  ;;  %v104_v7 = vld [vmem:[#allocation4 + $0x150] sm:$0xff] }
  0x37   :  { %v2728_v8 = vpack.c.bf16 %v109_v63, %v105_v62  ;;  %v108_v11 = vld [vmem:[#allocation4 + $0x170] sm:$0xff]  ;;  %v111_v12 = vld [vmem:[#allocation4 + $0x188] sm:$0xff]  ;;  %v113_v15 = vld [vmem:[#allocation4 + $0x198] sm:$0xff]  ;;  %v2731_v17 = vpack.c.bf16 %v106_v6, %v102_v4  ;;  %v134_v57 = vshrl.u32 %v133_v56, 7 }
  0x38   :  { %1862 = vmatpush1.bf16.msra.mxu0 %v2707_v52  ;;  %v115_v13 = vld [vmem:[#allocation4 + $0x1a8] sm:$0xff]  ;;  %v117_v16 = vld [vmem:[#allocation4 + $0x1b8] sm:$0xff]  ;;  %v110_v20 = vld [vmem:[#allocation4 + $0x180] sm:$0xff]  ;;  %v2735_v21 = vpack.c.bf16 %v108_v11, %v104_v7 }
  0x39   :  { %1894 = vmatpush1.bf16.msra.mxu1 %v2711_v53  ;;  %1864 = vmatprep.subr.bf16.mxu0 %v2713_v54  ;;  %v2737_v22 = vpack.c.bf16 %v115_v13, %v111_v12  ;;  %v114_v24 = vld [vmem:[#allocation4 + $0x1a0] sm:$0xff]  ;;  %v112_v25 = vld [vmem:[#allocation4 + $0x190] sm:$0xff]  ;;  %v2743_v29 = vpack.c.bf16 %v117_v16, %v113_v15  ;;  %v119_v31 = vld [vmem:[#allocation4 + $0x1c8] sm:$0xff]  ;;  %v135_v59 = vsub.s32 0, %v134_v57  ;;  %v139_v60 = vsub.s32 1, %v134_v57 }
  0x3a   :  { %1896 = vmatprep.subr.bf16.mxu1 %v2716_v58  ;;  %v126_v26 = vld [vmem:[%s3158_s0] sm:$0xff]  ;;  %v116_v30 = vld [vmem:[#allocation4 + $0x1b0] sm:$0xff]  ;;  %v123_v33 = vld [vmem:[#allocation4 + $0x1e8] sm:$0xff]  ;;  %v2749_v38 = vpack.c.bf16 %v114_v24, %v110_v20  ;;  %v143_v7 = vsub.s32 2, %v134_v57  ;;  %v147_v20 = vsub.s32 3, %v134_v57 }
  0x3b   :  { %129 = vperm.xlu0 %2394, %v126_v26   ;;  %v121_v34 = vld [vmem:[#allocation4 + $0x1d8] sm:$0xff]  ;;  %v1766_v37 = vld [vmem:[%s3158_s0 + $0x8] sm:$0xff]  ;;  %v2753_v39 = vpack.c.bf16 %v116_v30, %v112_v25  ;;  %v2755_v42 = vpack.c.bf16 %v123_v33, %v119_v31  ;;  %v118_v43 = vld [vmem:[#allocation4 + $0x1c0] sm:$0xff] }
  0x3c   :  { %1866 = vmatpush1.bf16.msra.mxu0 %v2719_v1  ;;  %v125_v35 = vld [vmem:[#allocation4 + $0x1f8] sm:$0xff]  ;;  %v122_v44 = vld [vmem:[#allocation4 + $0x1e0] sm:$0xff]  ;;  %v120_v47 = vld [vmem:[#allocation4 + $0x1d0] sm:$0xff] }
  0x3d   :  { %1898 = vmatpush1.bf16.msra.mxu1 %v2723_v2  ;;  %1868 = vmatprep.subr.bf16.mxu0 %v2725_v3  ;;  %v2758_v46 = vpack.c.bf16 %v125_v35, %v121_v34  ;;  %v124_v48 = vld [vmem:[#allocation4 + $0x1f0] sm:$0xff]  ;;  %v1778_v49 = vld [vmem:[%s3158_s0 + $0x20] sm:$0xff]  ;;  %v2764_v50 = vpack.c.bf16 %v122_v44, %v118_v43 }
  0x3e   :  { %1900 = vmatprep.subr.bf16.mxu1 %v2728_v8  ;;  %v2768_v51 = vpack.c.bf16 %v124_v48, %v120_v47  ;;  %v1786_v55 = vld [vmem:[%s3158_s0 + $0x30] sm:$0xff]  ;;  %v60_v61 = vld [vmem:[%s3159_s1] sm:$0xf] }
  0x3f   :  { %356 = vperm.xlu0 %2394, %v1766_v37   ;;  %v2817_v62 = vrot.slane %v60_v61, %v135_v59  ;;  %v2819_v63 = vrot.slane %v60_v61, %v139_v60  ;;  %v61_v4 = vld [vmem:[%s3160_s2] sm:$0xf]  ;;  %v2830_v16 = vrot.slane %v60_v61, %v143_v7  ;;  %v2837_v33 = vrot.slane %v60_v61, %v147_v20 }
  0x40   :  { %1870 = vmatpush1.bf16.msra.mxu0 %v2731_v17  ;;  %v2825_v12 = vrot.slane %v61_v4, %v135_v59  ;;  %v2828_v15 = vrot.slane %v61_v4, %v139_v60  ;;  %v2835_v31 = vrot.slane %v61_v4, %v143_v7  ;;  %v2841_v56 = vrot.slane %v61_v4, %v147_v20 }
  0x41   :  { %1902 = vmatpush1.bf16.msra.mxu1 %v2735_v21  ;;  %1872 = vmatprep.subr.bf16.mxu0 %v2737_v22 }
  0x42   :  { %1904 = vmatprep.subr.bf16.mxu1 %v2743_v29 }
  0x43   :  { %911 = vperm.xlu0 %2394, %v1778_v49  }
  0x44   :  { %1874 = vmatpush1.bf16.msra.mxu0 %v2749_v38 }
  0x45   :  { %1906 = vmatpush1.bf16.msra.mxu1 %v2753_v39  ;;  %1876 = vmatprep.subr.bf16.mxu0 %v2755_v42 }
  0x46   :  { %1908 = vmatprep.subr.bf16.mxu1 %v2758_v46 }
  0x47   :  { %1281 = vperm.xlu0 %2394, %v1786_v55  }
  0x48   :  { %1878 = vmatpush1.bf16.msra.mxu0 %v2764_v50 }
  0x49   :  { %1910 = vmatpush1.bf16.msra.mxu1 %v2768_v51  ;;  %1912 = vmatprep.subr.bf16.mxu0 %v2668_v5 }
  0x4a   :  { %1944 = vmatprep.subr.bf16.mxu1 %v2670_v9 }
  0x4b   :  { %247 = vmatmul.mubr.f32.vlgmr.msra.gmra.mrb[0].mxu0 %v2602_v0 }
  0x4c   :  { %318 = vmatmul.mubr.f32.vlgmr.msra.gmra.mrb[0].mxu1 %v2602_v0  ;;  %1914 = vmatpush1.bf16.msra.mxu0 %v2672_v10 }
  0x4d   :  { %1946 = vmatpush1.bf16.msra.mxu1 %v2675_v14  ;;  %1916 = vmatprep.subr.bf16.mxu0 %v2679_v18 }
  0x4e   :  { %1948 = vmatprep.subr.bf16.mxu1 %v2681_v19  ;;  %431 = vmatprep.mubr.f32.mxu0 %v2602_v0 }
  0x4f   :  { %502 = vmatprep.mubr.f32.mxu1 %v2602_v0 }
  0x50   :  { %1918 = vmatpush1.bf16.msra.mxu0 %v2684_v23 }
  0x51   :  { %1950 = vmatpush1.bf16.msra.mxu1 %v2688_v27  ;;  %1920 = vmatprep.subr.bf16.mxu0 %v2690_v28 }
  0x52   :  { %1952 = vmatprep.subr.bf16.mxu1 %v2692_v32 }
  0x54   :  { %1922 = vmatpush1.bf16.msra.mxu0 %v2695_v36 }
  0x55   :  { %1954 = vmatpush1.bf16.msra.mxu1 %v2699_v40  ;;  %1924 = vmatprep.subr.bf16.mxu0 %v2701_v41 }
  0x56   :  { %1956 = vmatprep.subr.bf16.mxu1 %v2704_v45 }
  0x58   :  { %1926 = vmatpush1.bf16.msra.mxu0 %v2707_v52 }
  0x59   :  { %1958 = vmatpush1.bf16.msra.mxu1 %v2711_v53  ;;  %1928 = vmatprep.subr.bf16.mxu0 %v2713_v54 }
  0x5a   :  { %1960 = vmatprep.subr.bf16.mxu1 %v2716_v58 }
  0x5c   :  { %1930 = vmatpush1.bf16.msra.mxu0 %v2719_v1 }
  0x5d   :  { %1962 = vmatpush1.bf16.msra.mxu1 %v2723_v2  ;;  %1932 = vmatprep.subr.bf16.mxu0 %v2725_v3 }
  0x5e   :  { %1964 = vmatprep.subr.bf16.mxu1 %v2728_v8 }
  0x60   :  { %1934 = vmatpush1.bf16.msra.mxu0 %v2731_v17 }
  0x61   :  { %1966 = vmatpush1.bf16.msra.mxu1 %v2735_v21  ;;  %1936 = vmatprep.subr.bf16.mxu0 %v2737_v22 }
  0x62   :  { %1968 = vmatprep.subr.bf16.mxu1 %v2743_v29 }
  0x64   :  { %1938 = vmatpush1.bf16.msra.mxu0 %v2749_v38 }
  0x65   :  { %1970 = vmatpush1.bf16.msra.mxu1 %v2753_v39  ;;  %1940 = vmatprep.subr.bf16.mxu0 %v2755_v42 }
  0x66   :  { %1972 = vmatprep.subr.bf16.mxu1 %v2758_v46 }
  0x68   :  { %1942 = vmatpush1.bf16.msra.mxu0 %v2764_v50 }
  0x69   :  { %1974 = vmatpush1.bf16.msra.mxu1 %v2768_v51  ;;  %1976 = vmatprep.subr.bf16.mxu0 %v2668_v5 }
  0x6a   :  { %2008 = vmatprep.subr.bf16.mxu1 %v2670_v9 }
  0xba   :  { %v130_v6 = vpop.permute.xlu0 %129 }
  0xbb   :  { %v153_v11 = vmul.f32 %v2817_v62, %v130_v6  ;;  %v154_v13 = vmul.f32 %v2819_v63, %v130_v6  ;;  %v155_v30 = vmul.f32 %v2830_v16, %v130_v6  ;;  %v156_v55 = vmul.f32 %v2837_v33, %v130_v6 }
  0xbd   :  { %v178_v24 = vadd.f32 %v2825_v12, %v153_v11  ;;  %v179_v25 = vadd.f32 %v2828_v15, %v154_v13  ;;  %v180_v48 = vadd.f32 %v2835_v31, %v155_v30  ;;  %v181_v59 = vadd.f32 %v2841_v56, %v156_v55  ;;  %v1790_v55 = vld [vmem:[%s3158_s0 + $0x38] sm:$0xff] }
 0x11e   :  { %v248_v26 = vpop.f32.mrb[0].mxu0 }
 0x11f   :  { %v324_v34 = vadd.f32 %v248_v26, %v178_v24  ;;  %v319_v35 = vpop.f32.mrb[0].mxu1  ;;  %v250_v37 = vpop.f32.mrb[1].mxu0 }
 0x120   :  { %v325_v43 = vadd.f32 %v250_v37, %v179_v25  ;;  %v321_v44 = vpop.f32.mrb[1].mxu1  ;;  %v326_v57 = vadd.f32 %v319_v35, %v180_v48  ;;  %v1774_v48 = vld [vmem:[%s3158_s0 + $0x18] sm:$0xff] }
 0x121   :  { %v1763_v47 = vmul.f32 -1.442695, %v324_v34  ;;  %v327_v61 = vadd.f32 %v321_v44, %v181_v59 }
 0x122   :  { %v1764_v49 = vmul.f32 -1.442695, %v325_v43  ;;  %v1765_v60 = vmul.f32 -1.442695, %v326_v57  ;;  %v357_v57 = vpop.permute.xlu0 %356 }
 0x123   :  { %2396 = vpow2.f32 %v1763_v47  ;;  %v1770_v47 = vld [vmem:[%s3158_s0 + $0x10] sm:$0xff]  ;;  %v359_v59 = vmul.f32 %v357_v57, %v2817_v62 }
 0x124   :  { %2398 = vpow2.f32 %v1764_v49  ;;  %541 = vperm.xlu1 %2395, %v1770_v47   ;;  %v1782_v49 = vld [vmem:[%s3158_s0 + $0x28] sm:$0xff] }
 0x125   :  { %2400 = vpow2.f32 %v1765_v60  ;;  %v360_v60 = vmul.f32 %v357_v57, %v2819_v63 }
 0x126   :  { %2402 = vtanh.f32 %v327_v61  ;;  %v363_v61 = vadd.f32 %v359_v59, %v2825_v12 }
 0x128   :  { %726 = vperm.xlu1 %2395, %v1774_v48  }
 0x12c   :  { %1096 = vperm.xlu1 %2395, %v1782_v49  }
 0x12d   :  { %v2397_v7 = vpop.eup %2396 }
 0x12e   :  { %v337_v11 = vadd.f32 1.0, %v2397_v7  ;;  %v2399_v13 = vpop.eup %2398 }
 0x12f   :  { %v338_v24 = vadd.f32 1.0, %v2399_v13  ;;  %v2401_v25 = vpop.eup %2400  ;;  %v364_v13 = vadd.f32 %v360_v60, %v2828_v15 }
 0x130   :  { %2404 = vrcp.f32 %v337_v11  ;;  %v2403_v26 = vpop.eup %2402  ;;  %v339_v20 = vadd.f32 1.0, %v2401_v25  ;;  %1466 = vperm.xlu1 %2395, %v1790_v55  }
 0x131   :  { %2406 = vrcp.f32 %v338_v24 }
 0x132   :  { %2408 = vrcp.f32 %v339_v20 }
 0x13a   :  { %v2405_v30 = vpop.eup %2404 }
 0x13b   :  { %v348_v6 = vmul.f32 %v2405_v30, %v2403_v26  ;;  %v2407_v4 = vpop.eup %2406 }
 0x13c   :  { %v347_v34 = vmul.f32 0.0, %v2407_v4  ;;  %v2409_v37 = vpop.eup %2408  ;;  %v361_v4 = vmul.f32 %v357_v57, %v2830_v16 }
 0x13e   :  { %v2844_v35 = vadd.f32 %v348_v6, %v347_v34  ;;  %v362_v34 = vmul.f32 %v357_v57, %v2837_v33 }
 0x140   :  { %2410 = vtanh.f32 %v2844_v35 }
 0x14a   :  { %v2411_v43 = vpop.eup %2410 }
 0x14b   :  { %v351_v44 = vmul.f32 %v2411_v43, %v2409_v37  ;;  %v365_v37 = vadd.f32 %v361_v4, %v2835_v31 }
 0x14d   :  { %432 = vmatmul.mubr.f32.vlgmr.msra.gmra.mrb[2].mxu0 %v351_v44  ;;  %503 = vmatmul.mubr.f32.vlgmr.msra.gmra.mrb[2].mxu1 %v351_v44  ;;  %v366_v44 = vadd.f32 %v362_v34, %v2841_v56 }
 0x14e   :  { %1978 = vmatpush1.bf16.msra.mxu0 %v2672_v10  ;;  %2010 = vmatpush1.bf16.msra.mxu1 %v2675_v14 }
 0x14f   :  { %1980 = vmatprep.subr.bf16.mxu0 %v2679_v18  ;;  %2012 = vmatprep.subr.bf16.mxu1 %v2681_v19 }
 0x150   :  { %616 = vmatprep.mubr.f32.mxu0 %v2602_v0  ;;  %687 = vmatprep.mubr.f32.mxu1 %v2602_v0 }
 0x152   :  { %1982 = vmatpush1.bf16.msra.mxu0 %v2684_v23  ;;  %2014 = vmatpush1.bf16.msra.mxu1 %v2688_v27 }
 0x153   :  { %1984 = vmatprep.subr.bf16.mxu0 %v2690_v28  ;;  %2016 = vmatprep.subr.bf16.mxu1 %v2692_v32 }
 0x156   :  { %1986 = vmatpush1.bf16.msra.mxu0 %v2695_v36  ;;  %2018 = vmatpush1.bf16.msra.mxu1 %v2699_v40 }
 0x157   :  { %1988 = vmatprep.subr.bf16.mxu0 %v2701_v41  ;;  %2020 = vmatprep.subr.bf16.mxu1 %v2704_v45 }
 0x15a   :  { %1990 = vmatpush1.bf16.msra.mxu0 %v2707_v52  ;;  %2022 = vmatpush1.bf16.msra.mxu1 %v2711_v53 }
 0x15b   :  { %1992 = vmatprep.subr.bf16.mxu0 %v2713_v54  ;;  %2024 = vmatprep.subr.bf16.mxu1 %v2716_v58 }
 0x15e   :  { %1994 = vmatpush1.bf16.msra.mxu0 %v2719_v1  ;;  %2026 = vmatpush1.bf16.msra.mxu1 %v2723_v2 }
 0x15f   :  { %1996 = vmatprep.subr.bf16.mxu0 %v2725_v3  ;;  %2028 = vmatprep.subr.bf16.mxu1 %v2728_v8 }
 0x162   :  { %1998 = vmatpush1.bf16.msra.mxu0 %v2731_v17  ;;  %2030 = vmatpush1.bf16.msra.mxu1 %v2735_v21 }
 0x163   :  { %2000 = vmatprep.subr.bf16.mxu0 %v2737_v22  ;;  %2032 = vmatprep.subr.bf16.mxu1 %v2743_v29 }
 0x166   :  { %2002 = vmatpush1.bf16.msra.mxu0 %v2749_v38  ;;  %2034 = vmatpush1.bf16.msra.mxu1 %v2753_v39 }
 0x167   :  { %2004 = vmatprep.subr.bf16.mxu0 %v2755_v42  ;;  %2036 = vmatprep.subr.bf16.mxu1 %v2758_v46 }
 0x16a   :  { %2006 = vmatpush1.bf16.msra.mxu0 %v2764_v50  ;;  %2038 = vmatpush1.bf16.msra.mxu1 %v2768_v51 }
 0x16b   :  { %2040 = vmatprep.subr.bf16.mxu0 %v2668_v5  ;;  %2072 = vmatprep.subr.bf16.mxu1 %v2670_v9 }
 0x220   :  { %v433_v7 = vpop.f32.mrb[2].mxu0  ;;  %v504_v11 = vpop.f32.mrb[2].mxu1 }
 0x221   :  { %v509_v24 = vadd.f32 %v433_v7, %v363_v61  ;;  %v435_v25 = vpop.f32.mrb[3].mxu0  ;;  %v506_v26 = vpop.f32.mrb[3].mxu1  ;;  %v511_v43 = vadd.f32 %v504_v11, %v365_v37 }
 0x222   :  { %v510_v30 = vadd.f32 %v435_v25, %v364_v13  ;;  %v512_v47 = vadd.f32 %v506_v26, %v366_v44 }
 0x223   :  { %v1767_v6 = vmul.f32 -1.442695, %v509_v24  ;;  %v1769_v48 = vmul.f32 -1.442695, %v511_v43 }
 0x224   :  { %v1768_v20 = vmul.f32 -1.442695, %v510_v30 }
 0x225   :  { %2412 = vpow2.f32 %v1767_v6 }
 0x226   :  { %2414 = vpow2.f32 %v1768_v20 }
 0x227   :  { %2416 = vtanh.f32 %v512_v47 }
 0x228   :  { %2418 = vpow2.f32 %v1769_v48 }
 0x22f   :  { %v2413_v49 = vpop.eup %2412 }
 0x230   :  { %v522_v55 = vadd.f32 1.0, %v2413_v49  ;;  %v2415_v59 = vpop.eup %2414 }
 0x231   :  { %v523_v60 = vadd.f32 1.0, %v2415_v59  ;;  %v2417_v61 = vpop.eup %2416 }
 0x232   :  { %2420 = vrcp.f32 %v522_v55  ;;  %v2419_v7 = vpop.eup %2418 }
 0x233   :  { %2422 = vrcp.f32 %v523_v60  ;;  %v524_v25 = vadd.f32 1.0, %v2419_v7 }
 0x235   :  { %2424 = vrcp.f32 %v524_v25 }
 0x23c   :  { %v2421_v13 = vpop.eup %2420 }
 0x23d   :  { %v533_v57 = vmul.f32 %v2421_v13, %v2417_v61  ;;  %v2423_v24 = vpop.eup %2422 }
 0x23e   :  { %v532_v11 = vmul.f32 %v2423_v24, %v2844_v35  ;;  %v542_v35 = vpop.permute.xlu1 %541 }
 0x23f   :  { %v2425_v26 = vpop.eup %2424  ;;  %v544_v20 = vmul.f32 %v542_v35, %v2817_v62  ;;  %v545_v34 = vmul.f32 %v542_v35, %v2819_v63  ;;  %v546_v49 = vmul.f32 %v542_v35, %v2830_v16  ;;  %v547_v13 = vmul.f32 %v542_v35, %v2837_v33 }
 0x240   :  { %v2902_v30 = vadd.f32 %v533_v57, %v532_v11 }
 0x241   :  { %v548_v37 = vadd.f32 %v544_v20, %v2825_v12  ;;  %v549_v43 = vadd.f32 %v545_v34, %v2828_v15  ;;  %v550_v57 = vadd.f32 %v546_v49, %v2835_v31  ;;  %v551_v24 = vadd.f32 %v547_v13, %v2841_v56 }
 0x242   :  { %2426 = vtanh.f32 %v2902_v30 }
 0x24c   :  { %v2427_v6 = vpop.eup %2426 }
 0x24d   :  { %v536_v4 = vmul.f32 %v2427_v6, %v2425_v26 }
 0x24f   :  { %617 = vmatmul.mubr.f32.vlgmr.msra.gmra.mrb[4].mxu0 %v536_v4  ;;  %688 = vmatmul.mubr.f32.vlgmr.msra.gmra.mrb[4].mxu1 %v536_v4 }
 0x250   :  { %2042 = vmatpush1.bf16.msra.mxu0 %v2672_v10  ;;  %2074 = vmatpush1.bf16.msra.mxu1 %v2675_v14 }
 0x251   :  { %2044 = vmatprep.subr.bf16.mxu0 %v2679_v18  ;;  %2076 = vmatprep.subr.bf16.mxu1 %v2681_v19 }
 0x252   :  { %801 = vmatprep.mubr.f32.mxu0 %v2602_v0  ;;  %872 = vmatprep.mubr.f32.mxu1 %v2602_v0 }
 0x254   :  { %2046 = vmatpush1.bf16.msra.mxu0 %v2684_v23  ;;  %2078 = vmatpush1.bf16.msra.mxu1 %v2688_v27 }
 0x255   :  { %2048 = vmatprep.subr.bf16.mxu0 %v2690_v28  ;;  %2080 = vmatprep.subr.bf16.mxu1 %v2692_v32 }
 0x258   :  { %2050 = vmatpush1.bf16.msra.mxu0 %v2695_v36  ;;  %2082 = vmatpush1.bf16.msra.mxu1 %v2699_v40 }
 0x259   :  { %2052 = vmatprep.subr.bf16.mxu0 %v2701_v41  ;;  %2084 = vmatprep.subr.bf16.mxu1 %v2704_v45 }
 0x25c   :  { %2054 = vmatpush1.bf16.msra.mxu0 %v2707_v52  ;;  %2086 = vmatpush1.bf16.msra.mxu1 %v2711_v53 }
 0x25d   :  { %2056 = vmatprep.subr.bf16.mxu0 %v2713_v54  ;;  %2088 = vmatprep.subr.bf16.mxu1 %v2716_v58 }
 0x260   :  { %2058 = vmatpush1.bf16.msra.mxu0 %v2719_v1  ;;  %2090 = vmatpush1.bf16.msra.mxu1 %v2723_v2 }
 0x261   :  { %2060 = vmatprep.subr.bf16.mxu0 %v2725_v3  ;;  %2092 = vmatprep.subr.bf16.mxu1 %v2728_v8 }
 0x264   :  { %2062 = vmatpush1.bf16.msra.mxu0 %v2731_v17  ;;  %2094 = vmatpush1.bf16.msra.mxu1 %v2735_v21 }
 0x265   :  { %2064 = vmatprep.subr.bf16.mxu0 %v2737_v22  ;;  %2096 = vmatprep.subr.bf16.mxu1 %v2743_v29 }
 0x268   :  { %2066 = vmatpush1.bf16.msra.mxu0 %v2749_v38  ;;  %2098 = vmatpush1.bf16.msra.mxu1 %v2753_v39 }
 0x269   :  { %2068 = vmatprep.subr.bf16.mxu0 %v2755_v42  ;;  %2100 = vmatprep.subr.bf16.mxu1 %v2758_v46 }
 0x26c   :  { %2070 = vmatpush1.bf16.msra.mxu0 %v2764_v50  ;;  %2102 = vmatpush1.bf16.msra.mxu1 %v2768_v51 }
 0x26d   :  { %2104 = vmatprep.subr.bf16.mxu0 %v2668_v5  ;;  %2136 = vmatprep.subr.bf16.mxu1 %v2670_v9 }
 0x322   :  { %v618_v44 = vpop.f32.mrb[4].mxu0  ;;  %v689_v47 = vpop.f32.mrb[4].mxu1 }
 0x323   :  { %v694_v48 = vadd.f32 %v618_v44, %v548_v37  ;;  %v620_v55 = vpop.f32.mrb[5].mxu0  ;;  %v691_v59 = vpop.f32.mrb[5].mxu1  ;;  %v696_v25 = vadd.f32 %v689_v47, %v550_v57 }
 0x324   :  { %v695_v60 = vadd.f32 %v620_v55, %v549_v43  ;;  %v697_v11 = vadd.f32 %v691_v59, %v551_v24 }
 0x325   :  { %v1771_v61 = vmul.f32 -1.442695, %v694_v48  ;;  %v1773_v26 = vmul.f32 -1.442695, %v696_v25 }
 0x326   :  { %v1772_v7 = vmul.f32 -1.442695, %v695_v60 }
 0x327   :  { %2428 = vpow2.f32 %v1771_v61 }
 0x328   :  { %2430 = vpow2.f32 %v1772_v7 }
 0x329   :  { %2432 = vtanh.f32 %v697_v11 }
 0x32a   :  { %2434 = vpow2.f32 %v1773_v26 }
 0x331   :  { %v2429_v6 = vpop.eup %2428 }
 0x332   :  { %v707_v4 = vadd.f32 1.0, %v2429_v6  ;;  %v2431_v20 = vpop.eup %2430 }
 0x333   :  { %v708_v34 = vadd.f32 1.0, %v2431_v20  ;;  %v2433_v37 = vpop.eup %2432 }
 0x334   :  { %2436 = vrcp.f32 %v707_v4  ;;  %v2435_v43 = vpop.eup %2434 }
 0x335   :  { %2438 = vrcp.f32 %v708_v34  ;;  %v709_v49 = vadd.f32 1.0, %v2435_v43 }
 0x337   :  { %2440 = vrcp.f32 %v709_v49 }
 0x33e   :  { %v2437_v35 = vpop.eup %2436 }
 0x33f   :  { %v718_v44 = vmul.f32 %v2437_v35, %v2433_v37  ;;  %v2439_v48 = vpop.eup %2438 }
 0x340   :  { %v717_v55 = vmul.f32 %v2439_v48, %v2902_v30  ;;  %v727_v30 = vpop.permute.xlu1 %726 }
 0x341   :  { %v2441_v47 = vpop.eup %2440  ;;  %v729_v7 = vmul.f32 %v727_v30, %v2817_v62  ;;  %v730_v13 = vmul.f32 %v727_v30, %v2819_v63  ;;  %v731_v37 = vmul.f32 %v727_v30, %v2830_v16  ;;  %v732_v35 = vmul.f32 %v727_v30, %v2837_v33 }
 0x342   :  { %v2948_v60 = vadd.f32 %v718_v44, %v717_v55 }
 0x343   :  { %v733_v57 = vadd.f32 %v729_v7, %v2825_v12  ;;  %v734_v11 = vadd.f32 %v730_v13, %v2828_v15  ;;  %v735_v44 = vadd.f32 %v731_v37, %v2835_v31  ;;  %v736_v49 = vadd.f32 %v732_v35, %v2841_v56 }
 0x344   :  { %2442 = vtanh.f32 %v2948_v60 }
 0x34e   :  { %v2443_v59 = vpop.eup %2442 }
 0x34f   :  { %v721_v61 = vmul.f32 %v2443_v59, %v2441_v47 }
 0x351   :  { %802 = vmatmul.mubr.f32.vlgmr.msra.gmra.mrb[6].mxu0 %v721_v61  ;;  %873 = vmatmul.mubr.f32.vlgmr.msra.gmra.mrb[6].mxu1 %v721_v61 }
 0x352   :  { %2106 = vmatpush1.bf16.msra.mxu0 %v2672_v10  ;;  %2138 = vmatpush1.bf16.msra.mxu1 %v2675_v14 }
 0x353   :  { %2108 = vmatprep.subr.bf16.mxu0 %v2679_v18  ;;  %2140 = vmatprep.subr.bf16.mxu1 %v2681_v19 }
 0x354   :  { %986 = vmatprep.mubr.f32.mxu0 %v2602_v0  ;;  %1057 = vmatprep.mubr.f32.mxu1 %v2602_v0 }
 0x356   :  { %2110 = vmatpush1.bf16.msra.mxu0 %v2684_v23  ;;  %2142 = vmatpush1.bf16.msra.mxu1 %v2688_v27 }
 0x357   :  { %2112 = vmatprep.subr.bf16.mxu0 %v2690_v28  ;;  %2144 = vmatprep.subr.bf16.mxu1 %v2692_v32 }
 0x35a   :  { %2114 = vmatpush1.bf16.msra.mxu0 %v2695_v36  ;;  %2146 = vmatpush1.bf16.msra.mxu1 %v2699_v40 }
 0x35b   :  { %2116 = vmatprep.subr.bf16.mxu0 %v2701_v41  ;;  %2148 = vmatprep.subr.bf16.mxu1 %v2704_v45 }
 0x35e   :  { %2118 = vmatpush1.bf16.msra.mxu0 %v2707_v52  ;;  %2150 = vmatpush1.bf16.msra.mxu1 %v2711_v53 }
 0x35f   :  { %2120 = vmatprep.subr.bf16.mxu0 %v2713_v54  ;;  %2152 = vmatprep.subr.bf16.mxu1 %v2716_v58 }
 0x362   :  { %2122 = vmatpush1.bf16.msra.mxu0 %v2719_v1  ;;  %2154 = vmatpush1.bf16.msra.mxu1 %v2723_v2 }
 0x363   :  { %2124 = vmatprep.subr.bf16.mxu0 %v2725_v3  ;;  %2156 = vmatprep.subr.bf16.mxu1 %v2728_v8 }
 0x366   :  { %2126 = vmatpush1.bf16.msra.mxu0 %v2731_v17  ;;  %2158 = vmatpush1.bf16.msra.mxu1 %v2735_v21 }
 0x367   :  { %2128 = vmatprep.subr.bf16.mxu0 %v2737_v22  ;;  %2160 = vmatprep.subr.bf16.mxu1 %v2743_v29 }
 0x36a   :  { %2130 = vmatpush1.bf16.msra.mxu0 %v2749_v38  ;;  %2162 = vmatpush1.bf16.msra.mxu1 %v2753_v39 }
 0x36b   :  { %2132 = vmatprep.subr.bf16.mxu0 %v2755_v42  ;;  %2164 = vmatprep.subr.bf16.mxu1 %v2758_v46 }
 0x36e   :  { %2134 = vmatpush1.bf16.msra.mxu0 %v2764_v50  ;;  %2166 = vmatpush1.bf16.msra.mxu1 %v2768_v51 }
 0x36f   :  { %2168 = vmatprep.subr.bf16.mxu0 %v2668_v5  ;;  %2200 = vmatprep.subr.bf16.mxu1 %v2670_v9 }
 0x424   :  { %v803_v24 = vpop.f32.mrb[6].mxu0  ;;  %v874_v25 = vpop.f32.mrb[6].mxu1 }
 0x425   :  { %v879_v26 = vadd.f32 %v803_v24, %v733_v57  ;;  %v805_v6 = vpop.f32.mrb[7].mxu0  ;;  %v876_v4 = vpop.f32.mrb[7].mxu1  ;;  %v881_v48 = vadd.f32 %v874_v25, %v735_v44 }
 0x426   :  { %v880_v20 = vadd.f32 %v805_v6, %v734_v11  ;;  %v882_v55 = vadd.f32 %v876_v4, %v736_v49 }
 0x427   :  { %v1775_v34 = vmul.f32 -1.442695, %v879_v26  ;;  %v1777_v47 = vmul.f32 -1.442695, %v881_v48 }
 0x428   :  { %v1776_v43 = vmul.f32 -1.442695, %v880_v20 }
 0x429   :  { %2444 = vpow2.f32 %v1775_v34 }
 0x42a   :  { %2446 = vpow2.f32 %v1776_v43 }
 0x42b   :  { %2448 = vtanh.f32 %v882_v55 }
 0x42c   :  { %2450 = vpow2.f32 %v1777_v47 }
 0x433   :  { %v2445_v59 = vpop.eup %2444 }
 0x434   :  { %v892_v61 = vadd.f32 1.0, %v2445_v59  ;;  %v2447_v7 = vpop.eup %2446 }
 0x435   :  { %v893_v13 = vadd.f32 1.0, %v2447_v7  ;;  %v2449_v57 = vpop.eup %2448 }
 0x436   :  { %2452 = vrcp.f32 %v892_v61  ;;  %v2451_v24 = vpop.eup %2450 }
 0x437   :  { %2454 = vrcp.f32 %v893_v13  ;;  %v894_v6 = vadd.f32 1.0, %v2451_v24 }
 0x439   :  { %2456 = vrcp.f32 %v894_v6 }
 0x440   :  { %v2453_v11 = vpop.eup %2452 }
 0x441   :  { %v903_v30 = vmul.f32 %v2453_v11, %v2449_v57  ;;  %v2455_v26 = vpop.eup %2454 }
 0x442   :  { %v902_v25 = vmul.f32 %v2455_v26, %v2948_v60  ;;  %v912_v60 = vpop.permute.xlu0 %911 }
 0x443   :  { %v2457_v4 = vpop.eup %2456  ;;  %v914_v43 = vmul.f32 %v912_v60, %v2817_v62  ;;  %v915_v35 = vmul.f32 %v912_v60, %v2819_v63  ;;  %v916_v57 = vmul.f32 %v912_v60, %v2830_v16  ;;  %v917_v11 = vmul.f32 %v912_v60, %v2837_v33 }
 0x444   :  { %v2994_v20 = vadd.f32 %v903_v30, %v902_v25 }
 0x445   :  { %v918_v44 = vadd.f32 %v914_v43, %v2825_v12  ;;  %v919_v55 = vadd.f32 %v915_v35, %v2828_v15  ;;  %v920_v30 = vadd.f32 %v916_v57, %v2835_v31  ;;  %v921_v6 = vadd.f32 %v917_v11, %v2841_v56 }
 0x446   :  { %2458 = vtanh.f32 %v2994_v20 }
 0x450   :  { %v2459_v34 = vpop.eup %2458 }
 0x451   :  { %v906_v37 = vmul.f32 %v2459_v34, %v2457_v4 }
 0x453   :  { %987 = vmatmul.mubr.f32.vlgmr.msra.gmra.mrb[8].mxu0 %v906_v37  ;;  %1058 = vmatmul.mubr.f32.vlgmr.msra.gmra.mrb[8].mxu1 %v906_v37 }
 0x454   :  { %2170 = vmatpush1.bf16.msra.mxu0 %v2672_v10  ;;  %2202 = vmatpush1.bf16.msra.mxu1 %v2675_v14 }
 0x455   :  { %2172 = vmatprep.subr.bf16.mxu0 %v2679_v18  ;;  %2204 = vmatprep.subr.bf16.mxu1 %v2681_v19 }
 0x456   :  { %1171 = vmatprep.mubr.f32.mxu0 %v2602_v0  ;;  %1242 = vmatprep.mubr.f32.mxu1 %v2602_v0 }
 0x458   :  { %2174 = vmatpush1.bf16.msra.mxu0 %v2684_v23  ;;  %2206 = vmatpush1.bf16.msra.mxu1 %v2688_v27 }
 0x459   :  { %2176 = vmatprep.subr.bf16.mxu0 %v2690_v28  ;;  %2208 = vmatprep.subr.bf16.mxu1 %v2692_v32 }
 0x45c   :  { %2178 = vmatpush1.bf16.msra.mxu0 %v2695_v36  ;;  %2210 = vmatpush1.bf16.msra.mxu1 %v2699_v40 }
 0x45d   :  { %2180 = vmatprep.subr.bf16.mxu0 %v2701_v41  ;;  %2212 = vmatprep.subr.bf16.mxu1 %v2704_v45 }
 0x460   :  { %2182 = vmatpush1.bf16.msra.mxu0 %v2707_v52  ;;  %2214 = vmatpush1.bf16.msra.mxu1 %v2711_v53 }
 0x461   :  { %2184 = vmatprep.subr.bf16.mxu0 %v2713_v54  ;;  %2216 = vmatprep.subr.bf16.mxu1 %v2716_v58 }
 0x464   :  { %2186 = vmatpush1.bf16.msra.mxu0 %v2719_v1  ;;  %2218 = vmatpush1.bf16.msra.mxu1 %v2723_v2 }
 0x465   :  { %2188 = vmatprep.subr.bf16.mxu0 %v2725_v3  ;;  %2220 = vmatprep.subr.bf16.mxu1 %v2728_v8 }
 0x468   :  { %2190 = vmatpush1.bf16.msra.mxu0 %v2731_v17  ;;  %2222 = vmatpush1.bf16.msra.mxu1 %v2735_v21 }
 0x469   :  { %2192 = vmatprep.subr.bf16.mxu0 %v2737_v22  ;;  %2224 = vmatprep.subr.bf16.mxu1 %v2743_v29 }
 0x46c   :  { %2194 = vmatpush1.bf16.msra.mxu0 %v2749_v38  ;;  %2226 = vmatpush1.bf16.msra.mxu1 %v2753_v39 }
 0x46d   :  { %2196 = vmatprep.subr.bf16.mxu0 %v2755_v42  ;;  %2228 = vmatprep.subr.bf16.mxu1 %v2758_v46 }
 0x470   :  { %2198 = vmatpush1.bf16.msra.mxu0 %v2764_v50  ;;  %2230 = vmatpush1.bf16.msra.mxu1 %v2768_v51 }
 0x471   :  { %2232 = vmatprep.subr.bf16.mxu0 %v2668_v5  ;;  %2264 = vmatprep.subr.bf16.mxu1 %v2670_v9 }
 0x526   :  { %v988_v48 = vpop.f32.mrb[8].mxu0  ;;  %v1059_v49 = vpop.f32.mrb[8].mxu1 }
 0x527   :  { %v1064_v47 = vadd.f32 %v988_v48, %v918_v44  ;;  %v990_v59 = vpop.f32.mrb[9].mxu0  ;;  %v1061_v61 = vpop.f32.mrb[9].mxu1  ;;  %v1066_v26 = vadd.f32 %v1059_v49, %v920_v30 }
 0x528   :  { %v1065_v7 = vadd.f32 %v990_v59, %v919_v55  ;;  %v1067_v25 = vadd.f32 %v1061_v61, %v921_v6 }
 0x529   :  { %v1779_v13 = vmul.f32 -1.442695, %v1064_v47  ;;  %v1781_v4 = vmul.f32 -1.442695, %v1066_v26 }
 0x52a   :  { %v1780_v24 = vmul.f32 -1.442695, %v1065_v7 }
 0x52b   :  { %2460 = vpow2.f32 %v1779_v13 }
 0x52c   :  { %2462 = vpow2.f32 %v1780_v24 }
 0x52d   :  { %2464 = vtanh.f32 %v1067_v25 }
 0x52e   :  { %2466 = vpow2.f32 %v1781_v4 }
 0x535   :  { %v2461_v34 = vpop.eup %2460 }
 0x536   :  { %v1077_v37 = vadd.f32 1.0, %v2461_v34  ;;  %v2463_v43 = vpop.eup %2462 }
 0x537   :  { %v1078_v35 = vadd.f32 1.0, %v2463_v43  ;;  %v2465_v44 = vpop.eup %2464 }
 0x538   :  { %2468 = vrcp.f32 %v1077_v37  ;;  %v2467_v48 = vpop.eup %2466 }
 0x539   :  { %2470 = vrcp.f32 %v1078_v35  ;;  %v1079_v59 = vadd.f32 1.0, %v2467_v48 }
 0x53b   :  { %2472 = vrcp.f32 %v1079_v59 }
 0x542   :  { %v2469_v55 = vpop.eup %2468 }
 0x543   :  { %v1088_v60 = vmul.f32 %v2469_v55, %v2465_v44  ;;  %v2471_v47 = vpop.eup %2470 }
 0x544   :  { %v1087_v49 = vmul.f32 %v2471_v47, %v2994_v20  ;;  %v1097_v20 = vpop.permute.xlu1 %1096 }
 0x545   :  { %v2473_v61 = vpop.eup %2472  ;;  %v1099_v24 = vmul.f32 %v1097_v20, %v2817_v62  ;;  %v1100_v11 = vmul.f32 %v1097_v20, %v2819_v63 }
 0x546   :  { %v3040_v7 = vadd.f32 %v1088_v60, %v1087_v49 }
 0x547   :  { %v1103_v30 = vadd.f32 %v1099_v24, %v2825_v12  ;;  %v1104_v25 = vadd.f32 %v1100_v11, %v2828_v15 }
 0x548   :  { %2474 = vtanh.f32 %v3040_v7 }
 0x552   :  { %v2475_v13 = vpop.eup %2474 }
 0x553   :  { %v1091_v57 = vmul.f32 %v2475_v13, %v2473_v61 }
 0x555   :  { %1172 = vmatmul.mubr.f32.vlgmr.msra.gmra.mrb[10].mxu0 %v1091_v57  ;;  %1243 = vmatmul.mubr.f32.vlgmr.msra.gmra.mrb[10].mxu1 %v1091_v57 }
 0x556   :  { %2234 = vmatpush1.bf16.msra.mxu0 %v2672_v10  ;;  %2266 = vmatpush1.bf16.msra.mxu1 %v2675_v14 }
 0x557   :  { %2236 = vmatprep.subr.bf16.mxu0 %v2679_v18  ;;  %2268 = vmatprep.subr.bf16.mxu1 %v2681_v19 }
 0x558   :  { %1356 = vmatprep.mubr.f32.mxu0 %v2602_v0  ;;  %1427 = vmatprep.mubr.f32.mxu1 %v2602_v0 }
 0x55a   :  { %2238 = vmatpush1.bf16.msra.mxu0 %v2684_v23  ;;  %2270 = vmatpush1.bf16.msra.mxu1 %v2688_v27 }
 0x55b   :  { %2240 = vmatprep.subr.bf16.mxu0 %v2690_v28  ;;  %2272 = vmatprep.subr.bf16.mxu1 %v2692_v32 }
 0x55e   :  { %2242 = vmatpush1.bf16.msra.mxu0 %v2695_v36  ;;  %2274 = vmatpush1.bf16.msra.mxu1 %v2699_v40 }
 0x55f   :  { %2244 = vmatprep.subr.bf16.mxu0 %v2701_v41  ;;  %2276 = vmatprep.subr.bf16.mxu1 %v2704_v45 }
 0x562   :  { %2246 = vmatpush1.bf16.msra.mxu0 %v2707_v52  ;;  %2278 = vmatpush1.bf16.msra.mxu1 %v2711_v53 }
 0x563   :  { %2248 = vmatprep.subr.bf16.mxu0 %v2713_v54  ;;  %2280 = vmatprep.subr.bf16.mxu1 %v2716_v58 }
 0x566   :  { %2250 = vmatpush1.bf16.msra.mxu0 %v2719_v1  ;;  %2282 = vmatpush1.bf16.msra.mxu1 %v2723_v2 }
 0x567   :  { %2252 = vmatprep.subr.bf16.mxu0 %v2725_v3  ;;  %2284 = vmatprep.subr.bf16.mxu1 %v2728_v8 }
 0x56a   :  { %2254 = vmatpush1.bf16.msra.mxu0 %v2731_v17  ;;  %2286 = vmatpush1.bf16.msra.mxu1 %v2735_v21 }
 0x56b   :  { %2256 = vmatprep.subr.bf16.mxu0 %v2737_v22  ;;  %2288 = vmatprep.subr.bf16.mxu1 %v2743_v29 }
 0x56e   :  { %2258 = vmatpush1.bf16.msra.mxu0 %v2749_v38  ;;  %2290 = vmatpush1.bf16.msra.mxu1 %v2753_v39 }
 0x56f   :  { %2260 = vmatprep.subr.bf16.mxu0 %v2755_v42  ;;  %2292 = vmatprep.subr.bf16.mxu1 %v2758_v46 }
 0x572   :  { %2262 = vmatpush1.bf16.msra.mxu0 %v2764_v50  ;;  %2294 = vmatpush1.bf16.msra.mxu1 %v2768_v51 }
 0x573   :  { %2296 = vmatprep.subr.bf16.mxu0 %v2668_v5  ;;  %2328 = vmatprep.subr.bf16.mxu1 %v2670_v9  ;;  %v1101_v5 = vmul.f32 %v1097_v20, %v2830_v16  ;;  %v1102_v9 = vmul.f32 %v1097_v20, %v2837_v33 }
 0x575   :  { %v1105_v48 = vadd.f32 %v1101_v5, %v2835_v31  ;;  %v1106_v60 = vadd.f32 %v1102_v9, %v2841_v56 }
 0x628   :  { %v1173_v26 = vpop.f32.mrb[10].mxu0  ;;  %v1244_v6 = vpop.f32.mrb[10].mxu1 }
 0x629   :  { %v1249_v4 = vadd.f32 %v1173_v26, %v1103_v30  ;;  %v1175_v34 = vpop.f32.mrb[11].mxu0  ;;  %v1246_v37 = vpop.f32.mrb[11].mxu1  ;;  %v1251_v55 = vadd.f32 %v1244_v6, %v1105_v48  ;;  %v1653_v48 = vld [vmem:[#allocation7] sm:$0xff] }
 0x62a   :  { %v1250_v43 = vadd.f32 %v1175_v34, %v1104_v25  ;;  %v1252_v47 = vadd.f32 %v1246_v37, %v1106_v60 }
 0x62b   :  { %v1783_v35 = vmul.f32 -1.442695, %v1249_v4  ;;  %v1785_v59 = vmul.f32 -1.442695, %v1251_v55  ;;  %v1654_v55 = vld [vmem:[#allocation7 + $0x8] sm:$0xff] }
 0x62c   :  { %v1784_v44 = vmul.f32 -1.442695, %v1250_v43  ;;  %v2360_v60 = vpack.c.bf16 %v1654_v55, %v1653_v48 }
 0x62d   :  { %2476 = vpow2.f32 %v1783_v35 }
 0x62e   :  { %2478 = vpow2.f32 %v1784_v44 }
 0x62f   :  { %2480 = vtanh.f32 %v1252_v47  ;;  %v2604_v47 = vmov 0.0|0.0  }
 0x630   :  { %2482 = vpow2.f32 %v1785_v59  ;;  %v1655_v59 = vld [vmem:[#allocation7 + $0x10] sm:$0xff] }
 0x637   :  { %v2477_v49 = vpop.eup %2476 }
 0x638   :  { %v1262_v61 = vadd.f32 1.0, %v2477_v49  ;;  %v2479_v13 = vpop.eup %2478  ;;  %v1656_v49 = vld [vmem:[#allocation7 + $0x18] sm:$0xff] }
 0x639   :  { %v1263_v57 = vadd.f32 1.0, %v2479_v13  ;;  %v2481_v24 = vpop.eup %2480  ;;  %v1657_v13 = vld [vmem:[#allocation7 + $0x20] sm:$0xff] }
 0x63a   :  { %2484 = vrcp.f32 %v1262_v61  ;;  %v2483_v11 = vpop.eup %2482  ;;  %v2363_v61 = vpack.c.bf16 %v1656_v49, %v1655_v59 }
 0x63b   :  { %2486 = vrcp.f32 %v1263_v57  ;;  %v1264_v25 = vadd.f32 1.0, %v2483_v11  ;;  %v1658_v57 = vld [vmem:[#allocation7 + $0x28] sm:$0xff]  ;;  %v1659_v11 = vld [vmem:[#allocation7 + $0x30] sm:$0xff] }
 0x63d   :  { %2488 = vrcp.f32 %v1264_v25  ;;  %v1662_v25 = vld [vmem:[#allocation7 + $0x48] sm:$0xff] }
 0x644   :  { %v2485_v30 = vpop.eup %2484 }
 0x645   :  { %v1273_v20 = vmul.f32 %v2485_v30, %v2481_v24  ;;  %v2487_v26 = vpop.eup %2486  ;;  %v2366_v24 = vpack.c.bf16 %v1658_v57, %v1657_v13  ;;  %v1660_v30 = vld [vmem:[#allocation7 + $0x38] sm:$0xff] }
 0x646   :  { %v1272_v6 = vmul.f32 %v2487_v26, %v3040_v7  ;;  %v1661_v26 = vld [vmem:[#allocation7 + $0x40] sm:$0xff] }
 0x647   :  { %v2489_v34 = vpop.eup %2488 }
 0x648   :  { %v3086_v4 = vadd.f32 %v1273_v20, %v1272_v6  ;;  %v2369_v20 = vpack.c.bf16 %v1660_v30, %v1659_v11  ;;  %v2372_v6 = vpack.c.bf16 %v1662_v25, %v1661_v26 }
 0x64a   :  { %2490 = vtanh.f32 %v3086_v4 }
 0x654   :  { %v2491_v37 = vpop.eup %2490 }
 0x655   :  { %v1276_v43 = vmul.f32 %v2491_v37, %v2489_v34  ;;  %v1664_v34 = vld [vmem:[#allocation7 + $0x58] sm:$0xff] }
 0x657   :  { %1357 = vmatmul.mubr.f32.vlgmr.msra.gmra.mrb[12].mxu0 %v1276_v43  ;;  %1428 = vmatmul.mubr.f32.vlgmr.msra.gmra.mrb[12].mxu1 %v1276_v43  ;;  %v1665_v43 = vld [vmem:[#allocation7 + $0x60] sm:$0xff] }
 0x658   :  { %2298 = vmatpush1.bf16.msra.mxu0 %v2672_v10  ;;  %2330 = vmatpush1.bf16.msra.mxu1 %v2675_v14  ;;  %v1282_v10 = vpop.permute.xlu0 %1281 }
 0x659   :  { %2300 = vmatprep.subr.bf16.mxu0 %v2679_v18  ;;  %2332 = vmatprep.subr.bf16.mxu1 %v2681_v19  ;;  %v1284_v14 = vmul.f32 %v1282_v10, %v2817_v62  ;;  %v1285_v18 = vmul.f32 %v1282_v10, %v2819_v63 }
 0x65a   :  { %1541 = vmatprep.mubr.f32.mxu0 %v2602_v0  ;;  %1612 = vmatprep.mubr.f32.mxu1 %v2602_v0 }
 0x65b   :  { %v1288_v19 = vadd.f32 %v1284_v14, %v2825_v12 }
 0x65c   :  { %2302 = vmatpush1.bf16.msra.mxu0 %v2684_v23  ;;  %2334 = vmatpush1.bf16.msra.mxu1 %v2688_v27 }
 0x65d   :  { %2304 = vmatprep.subr.bf16.mxu0 %v2690_v28  ;;  %2336 = vmatprep.subr.bf16.mxu1 %v2692_v32  ;;  %v1289_v28 = vadd.f32 %v1285_v18, %v2828_v15  ;;  %v1667_v18 = vld [vmem:[#allocation7 + $0x70] sm:$0xff] }
 0x660   :  { %2306 = vmatpush1.bf16.msra.mxu0 %v2695_v36  ;;  %2338 = vmatpush1.bf16.msra.mxu1 %v2699_v40 }
 0x661   :  { %2308 = vmatprep.subr.bf16.mxu0 %v2701_v41  ;;  %2340 = vmatprep.subr.bf16.mxu1 %v2704_v45  ;;  %v1286_v45 = vmul.f32 %v1282_v10, %v2830_v16 }
 0x664   :  { %2310 = vmatpush1.bf16.msra.mxu0 %v2707_v52  ;;  %2342 = vmatpush1.bf16.msra.mxu1 %v2711_v53 }
 0x665   :  { %2312 = vmatprep.subr.bf16.mxu0 %v2713_v54  ;;  %2344 = vmatprep.subr.bf16.mxu1 %v2716_v58  ;;  %v1287_v54 = vmul.f32 %v1282_v10, %v2837_v33  ;;  %v1290_v58 = vadd.f32 %v1286_v45, %v2835_v31  ;;  %v1666_v10 = vld [vmem:[#allocation7 + $0x68] sm:$0xff] }
 0x666   :  { %v2378_v14 = vpack.c.bf16 %v1666_v10, %v1665_v43 }
 0x668   :  { %2314 = vmatpush1.bf16.msra.mxu0 %v2719_v1  ;;  %2346 = vmatpush1.bf16.msra.mxu1 %v2723_v2  ;;  %v1291_v2 = vadd.f32 %v1287_v54, %v2841_v56 }
 0x669   :  { %2316 = vmatprep.subr.bf16.mxu0 %v2725_v3  ;;  %2348 = vmatprep.subr.bf16.mxu1 %v2728_v8 }
 0x66c   :  { %2318 = vmatpush1.bf16.msra.mxu0 %v2731_v17  ;;  %2350 = vmatpush1.bf16.msra.mxu1 %v2735_v21 }
 0x66d   :  { %2320 = vmatprep.subr.bf16.mxu0 %v2737_v22  ;;  %2352 = vmatprep.subr.bf16.mxu1 %v2743_v29 }
 0x670   :  { %2322 = vmatpush1.bf16.msra.mxu0 %v2749_v38  ;;  %2354 = vmatpush1.bf16.msra.mxu1 %v2753_v39 }
 0x671   :  { %2324 = vmatprep.subr.bf16.mxu0 %v2755_v42  ;;  %2356 = vmatprep.subr.bf16.mxu1 %v2758_v46 }
 0x674   :  { %2326 = vmatpush1.bf16.msra.mxu0 %v2764_v50  ;;  %2358 = vmatpush1.bf16.msra.mxu1 %v2768_v51 }
 0x675   :  { %2359 = vmatprep.subr.bf16.mxu0 %v2604_v47 }
 0x72a   :  { %v1358_v23 = vpop.f32.mrb[12].mxu0  ;;  %v1429_v27 = vpop.f32.mrb[12].mxu1 }
 0x72b   :  { %v1434_v32 = vadd.f32 %v1358_v23, %v1288_v19  ;;  %v1360_v36 = vpop.f32.mrb[13].mxu0  ;;  %v1431_v40 = vpop.f32.mrb[13].mxu1  ;;  %v1436_v1 = vadd.f32 %v1429_v27, %v1290_v58  ;;  %v1668_v19 = vld [vmem:[#allocation7 + $0x78] sm:$0xff] }
 0x72c   :  { %v1435_v41 = vadd.f32 %v1360_v36, %v1289_v28  ;;  %v1437_v3 = vadd.f32 %v1431_v40, %v1291_v2  ;;  %v2381_v23 = vpack.c.bf16 %v1668_v19, %v1667_v18  ;;  %v1467_v27 = vpop.permute.xlu1 %1466 }
 0x72d   :  { %v1787_v52 = vmul.f32 -1.442695, %v1434_v32  ;;  %v1789_v8 = vmul.f32 -1.442695, %v1436_v1  ;;  %v1469_v28 = vmul.f32 %v1467_v27, %v2817_v62  ;;  %v1470_v32 = vmul.f32 %v1467_v27, %v2819_v63 }
 0x72e   :  { %v1788_v53 = vmul.f32 -1.442695, %v1435_v41  ;;  %v1471_v58 = vmul.f32 %v1467_v27, %v2830_v16 }
 0x72f   :  { %2492 = vpow2.f32 %v1787_v52  ;;  %v1473_v36 = vadd.f32 %v1469_v28, %v2825_v12 }
 0x730   :  { %2494 = vpow2.f32 %v1788_v53  ;;  %v1475_v62 = vadd.f32 %v1471_v58, %v2835_v31 }
 0x731   :  { %2496 = vtanh.f32 %v1437_v3  ;;  %v1472_v3 = vmul.f32 %v1467_v27, %v2837_v33 }
 0x732   :  { %2498 = vpow2.f32 %v1789_v8 }
 0x733   :  { %v1476_v12 = vadd.f32 %v1472_v3, %v2841_v56 }
 0x739   :  { %v2493_v17 = vpop.eup %2492 }
 0x73a   :  { %v1447_v21 = vadd.f32 1.0, %v2493_v17  ;;  %v2495_v22 = vpop.eup %2494 }
 0x73b   :  { %v1448_v29 = vadd.f32 1.0, %v2495_v22  ;;  %v2497_v38 = vpop.eup %2496 }
 0x73c   :  { %2500 = vrcp.f32 %v1447_v21  ;;  %v2499_v39 = vpop.eup %2498 }
 0x73d   :  { %2502 = vrcp.f32 %v1448_v29  ;;  %v1449_v51 = vadd.f32 1.0, %v2499_v39 }
 0x73f   :  { %2504 = vrcp.f32 %v1449_v51 }
 0x746   :  { %v2501_v42 = vpop.eup %2500 }
 0x747   :  { %v1458_v46 = vmul.f32 %v2501_v42, %v2497_v38  ;;  %v2503_v50 = vpop.eup %2502 }
 0x748   :  { %v1457_v7 = vmul.f32 %v2503_v50, %v3086_v4  ;;  %v1663_v4 = vld [vmem:[#allocation7 + $0x50] sm:$0xff] }
 0x749   :  { %v2505_v5 = vpop.eup %2504  ;;  %v2375_v37 = vpack.c.bf16 %v1664_v34, %v1663_v4 }
 0x74a   :  { %v3130_v35 = vadd.f32 %v1458_v46, %v1457_v7 }
 0x74c   :  { %2506 = vtanh.f32 %v3130_v35 }
 0x756   :  { %v2507_v44 = vpop.eup %2506 }
 0x757   :  { %v1461_v9 = vmul.f32 %v2507_v44, %v2505_v5  ;;  %v1794_v5 = vld [vmem:[%s3163_s5] ss:$0 sm:$0xff] }
 0x759   :  { %1542 = vmatmul.mubr.f32.vlgmr.msra.gmra.mrb[14].mxu0 %v1461_v9  ;;  %1613 = vmatmul.mubr.f32.vlgmr.msra.gmra.mrb[14].mxu1 %v1461_v9 }
 0x75a   :  { %2361 = vmatpush3.bf16.msra.mxu0 %v2360_v60  ;;  %1844 = vmatprep.mubr.msk.f32.mxu0 %vm2605_vm0, %v2602_v0  ;;  %v1474_v0 = vadd.f32 %v1470_v32, %v2828_v15 }
 0x75b   :  { %2362 = vmatprep.subr.bf16.mxu0 %v2604_v47 }
 0x75e   :  { %2364 = vmatpush3.bf16.msra.mxu0 %v2363_v61 }
 0x75f   :  { %2365 = vmatprep.subr.bf16.mxu0 %v2604_v47 }
 0x762   :  { %2367 = vmatpush3.bf16.msra.mxu0 %v2366_v24 }
 0x763   :  { %2368 = vmatprep.subr.bf16.mxu0 %v2604_v47 }
 0x766   :  { %2370 = vmatpush3.bf16.msra.mxu0 %v2369_v20 }
 0x767   :  { %2371 = vmatprep.subr.bf16.mxu0 %v2604_v47 }
 0x76a   :  { %2373 = vmatpush3.bf16.msra.mxu0 %v2372_v6 }
 0x76b   :  { %2374 = vmatprep.subr.bf16.mxu0 %v2604_v47 }
 0x76e   :  { %2376 = vmatpush3.bf16.msra.mxu0 %v2375_v37 }
 0x76f   :  { %2377 = vmatprep.subr.bf16.mxu0 %v2604_v47 }
 0x772   :  { %2379 = vmatpush3.bf16.msra.mxu0 %v2378_v14 }
 0x773   :  { %2380 = vmatprep.subr.bf16.mxu0 %v2604_v47 }
 0x776   :  { %2382 = vmatpush3.bf16.msra.mxu0 %v2381_v23 }
 0x82c   :  { %v1543_v40 = vpop.f32.mrb[14].mxu0  ;;  %v1614_v41 = vpop.f32.mrb[14].mxu1 }
 0x82d   :  { %v1619_v45 = vadd.f32 %v1543_v40, %v1473_v36  ;;  %v1545_v52 = vpop.f32.mrb[15].mxu0  ;;  %v1616_v53 = vpop.f32.mrb[15].mxu1  ;;  %v1621_v63 = vadd.f32 %v1614_v41, %v1475_v62 }
 0x82e   :  { %v1620_v54 = vadd.f32 %v1545_v52, %v1474_v0  ;;  %v1622_v8 = vadd.f32 %v1616_v53, %v1476_v12 }
 0x82f   :  { %v1791_v1 = vmul.f32 -1.442695, %v1619_v45  ;;  %v1793_v17 = vmul.f32 -1.442695, %v1621_v63 }
 0x830   :  { %v1792_v2 = vmul.f32 -1.442695, %v1620_v54 }
 0x831   :  { %2508 = vpow2.f32 %v1791_v1 }
 0x832   :  { %2510 = vpow2.f32 %v1792_v2 }
 0x833   :  { %2512 = vtanh.f32 %v1622_v8 }
 0x834   :  { %2514 = vpow2.f32 %v1793_v17 }
 0x83b   :  { %v2509_v15 = vpop.eup %2508 }
 0x83c   :  { %v1632_v21 = vadd.f32 1.0, %v2509_v15  ;;  %v2511_v22 = vpop.eup %2510 }
 0x83d   :  { %v1633_v16 = vadd.f32 1.0, %v2511_v22  ;;  %v2513_v29 = vpop.eup %2512 }
 0x83e   :  { %2516 = vrcp.f32 %v1632_v21  ;;  %v2515_v38 = vpop.eup %2514 }
 0x83f   :  { %2518 = vrcp.f32 %v1633_v16  ;;  %v1634_v31 = vadd.f32 1.0, %v2515_v38 }
 0x841   :  { %2520 = vrcp.f32 %v1634_v31 }
 0x848   :  { %v2517_v39 = vpop.eup %2516 }
 0x849   :  { %v1643_v33 = vmul.f32 %v2517_v39, %v2513_v29  ;;  %v2519_v42 = vpop.eup %2518 }
 0x84a   :  { %v1642_v46 = vmul.f32 %v2519_v42, %v3130_v35 }
 0x84b   :  { %v2521_v56 = vpop.eup %2520 }
 0x84c   :  { %v1644_v50 = vadd.f32 %v1643_v33, %v1642_v46 }
 0x84e   :  { %2522 = vtanh.f32 %v1644_v50 }
 0x858   :  { %v2523_v51 = vpop.eup %2522 }
 0x859   :  { %v1646_v7 = vmul.f32 %v2523_v51, %v2521_v56 }
 0x85b   :  { %1845 = vmatmul.mubr.f32.vlgmr.msra.gmra.mrb[16].mxu0 %v1646_v7 }
 0x92e   :  { %v1742_v44 = vpop.f32.mrb[16].mxu0 }
 0x92f   :  { %v1743_v9 = vadd.f32 %v1794_v5, %v1742_v44  ;;  %v1846_v48 = vpop.f32.mrb[17].mxu0 }
 0x931   :  { %1746 = vst [vmem:[#allocation9] sm:$0xff] %v1743_v9 }
 0x932   :  { %2579 = shalt.err (!%p2576_p6)
}
 0x933   :  { %s2580_s22 = scalar_lea.hbm %s3164_s6, 128 }
 0x934   :  { %p2581_p7 = scmp.ne.s32.totalorder %s3164_s6, %s2580_s22  ;;  %p2584_p8 = scmp.lt.u32.totalorder %s2580_s22, %s3164_s6 }
 0x936   :  { %p2586_p9 = pnand %p2584_p8, %p2581_p7 }
 0x938   :  { %2589 = shalt.err (!%p2586_p9)
}
 0x939   :  { %1756 = dma.vmem_to_hbm [thread:$0]  %s1754_s19, 128, %s3164_s6, [#allocation6]  }
 0x93a   :  { %2594 = dma.done.wait [#allocation6], 128  }
 0x93b   :  { %2595 = vsyncadd [#allocation6], 4294967168 }
 0x93c   :  { %1760 = vsyncpa [#allocation5], 1 }
 0x93d   :  { %1761 = vsyncpa [#allocation8], 1 }
 0x93e   :  { %1762 = vsyncpa [#allocation6], 1 }

</bundles_post_ra>
